<compile_context>
chip_gen: v7x
topology: tpu7x:2x2x1
jax: 0.10.0
libtpu: 0.0.40
codegen_flags: <defaults>
</compile_context>

<pallas_src>
import math

import jax
import jax.numpy as jnp
from jax import lax
from jax.experimental import pallas as pl
from jax.experimental.pallas import tpu as pltpu


MATMUL_DTYPE = jnp.bfloat16   # MXU-native input dtype; accumulation stays f32.


def _sigmoid(x):
    # Keep the divide on the EUP reciprocal slot instead of a VPU divide chain.
    # (approx=True -> ~2^-12 rel error; fine for the test tolerance.)
    return pl.reciprocal(1.0 + jnp.exp(-x), approx=True)


def _silu(x):
    return x * _sigmoid(x)


def _softplus(x):
    # Matches F.softplus(threshold=20).
    return jnp.where(x > 20.0, x, jnp.log(1.0 + jnp.exp(jnp.minimum(x, 20.0))))


def _round_up(n, m):
    return ((n + m - 1) // m) * m


def mamba_layer_kernel(
    # --- inputs ---
    x_ref,        # (Lc, d_model)  f32   activation chunk for batch row b
    w_in_x_ref,   # (d_model, d_inner)        bf16  in_proj, x branch
    w_in_z_ref,   # (d_model, d_inner)        bf16  in_proj, gate branch
    w_conv_ref,   # (d_conv, d_inner)         f32   depthwise conv weight
    b_conv_ref,   # (1, d_inner)              f32   depthwise conv bias
    w_xbc_ref,    # (d_inner, n_cols)         bf16  fused x_proj [dt|B|C|pad], lane-dense
    w_dt_ref,     # (dt_pad, d_inner)         bf16  dt_proj (rows zero-padded to dt_pad)
    b_dt_ref,     # (1, d_inner)              f32   dt_proj bias
    neg_a_ref,    # (d_state, d_inner)        f32   A = -exp(A_log)
    d_skip_ref,   # (1, d_inner)              f32   D skip
    w_out_ref,    # (d_inner, d_model)        bf16  out_proj
    # --- outputs ---
    o_ref,        # (Lc, d_model)  f32   Mamba(x) + x
    # --- scratch (persists across L-chunk grid steps) ---
    h_scr,        # (d_state, d_inner)      f32   carried scan state
    tail_scr,     # (d_conv-1, d_inner)     f32   conv inputs from previous chunk
    dA_scr,       # (Lc, d_state, d_inner)  bf16  bulk exp(dt*A)
    hx_scr,       # (Lc, d_state, d_inner)  bf16  dt*B*x in, h trajectory out
):
    Lc, Dm = x_ref.shape
    d_conv, d_inner = w_conv_ref.shape
    dt_pad = w_dt_ref.shape[0]          # 128-multiple; lane-aligned dt segment
    d_state = neg_a_ref.shape[0]

    # Reset carried state at the start of every batch row (l == 0).
    @pl.when(pl.program_id(1) == 0)
    def _():
        h_scr[...] = jnp.zeros_like(h_scr)
        tail_scr[...] = jnp.zeros_like(tail_scr)

    x = x_ref[...]
    x_mm = x.astype(MATMUL_DTYPE)

    # ---- in_proj (weights pre-split -> no lane slicing of a fused xz) ----
    xi = jnp.dot(x_mm, w_in_x_ref[...], preferred_element_type=jnp.float32)
    z = jnp.dot(x_mm, w_in_z_ref[...], preferred_element_type=jnp.float32)

    # ---- depthwise causal conv over L, vectorized as d_conv shifted taps ----
    ext = jnp.concatenate([tail_scr[...], xi], axis=0)   # (Lc + d_conv - 1, Di)
    wconv = w_conv_ref[...]
    acc = jnp.zeros((Lc, d_inner), jnp.float32) + b_conv_ref[...]
    for k in range(d_conv):                 # d_conv is a tiny static constant
        acc = acc + wconv[k:k + 1, :] * ext[k:k + Lc, :]
    xc = _silu(acc)
    tail_scr[...] = xi[Lc - (d_conv - 1):, :]   # carry conv state to next chunk
    xc_mm = xc.astype(MATMUL_DTYPE)

    # ---- fused x_proj: ONE lane-dense matmul over [dt_pad | B | C | pad] ----
    dbc = jnp.dot(xc_mm, w_xbc_ref[...], preferred_element_type=jnp.float32)
    # dt: second small MXU pass with a lane-aligned K (dt_pad, zero-padded rows).
    dt_lin = jnp.dot(dbc[:, :dt_pad].astype(MATMUL_DTYPE), w_dt_ref[...],
                     preferred_element_type=jnp.float32) + b_dt_ref[...]
    dt = _softplus(dt_lin)                                           # (Lc, Di)
    Bm = dbc[:, dt_pad:dt_pad + d_state]                             # (Lc, S)
    Cm = dbc[:, dt_pad + d_state:dt_pad + 2 * d_state]               # (Lc, S)

    # ---- selective scan ----
    # Bulk precompute off the serial critical path (dense EUP/VPU passes).
    # Note: with d_state < 8 the (Lc, S, Di) slabs pad sublanes; standard Mamba
    # d_state=16 is exactly one bf16 sublane tile.
    A = neg_a_ref[...]                                               # (S, Di)
    dA_scr[...] = jnp.exp(dt[:, None, :] * A[None, :, :]).astype(dA_scr.dtype)
    hx_scr[...] = ((dt * xc)[:, None, :] * Bm[:, :, None]).astype(hx_scr.dtype)

    # Serial recurrence: per step only h = dA*h + dBx, with h carried in f32
    # registers (bf16 is only the stored trajectory).  The C contraction is
    # done densely after the loop, off the serial critical path.
    def step(t, h):
        h = dA_scr[t].astype(jnp.float32) * h + hx_scr[t].astype(jnp.float32)
        hx_scr[t] = h.astype(hx_scr.dtype)
        return h

    h_last = lax.fori_loop(0, Lc, step, h_scr[...], unroll=min(8, Lc))
    h_scr[...] = h_last

    y = jnp.sum(hx_scr[...].astype(jnp.float32) * Cm[:, :, None], axis=1)
    y = y + d_skip_ref[...] * xc                                     # D skip
    y = y * _silu(z)                                                 # gate

    # ---- out_proj + residual (MambaBlock: x = Mamba(x) + x) ----
    out = jnp.dot(y.astype(MATMUL_DTYPE), w_out_ref[...],
                  preferred_element_type=jnp.float32)
    o_ref[...] = out + x


def _weight_spec(w, single_buffer):
    zeros = (0,) * w.ndim
    if single_buffer:
        # Weights never change across the grid; single-buffering halves their
        # VMEM residency (matters at real d_model on v7x's 64 MiB VMEM).
        return pl.BlockSpec(w.shape, lambda b, l: zeros,
                            pipeline_mode=pl.Buffered(1))
    return pl.BlockSpec(w.shape, lambda b, l: zeros)


def _choose_chunk(L, requested=None, target=128):
    if requested is not None and L % requested == 0:
        return requested
    if L <= target:
        return L
    for c in range(target, 7, -1):
        if L % c == 0 and c % 8 == 0:
            return c
    return L


def _default_vmem_limit_bytes():
    # Per-generation budget: ~75% of physical VMEM with a 100 MiB cap
    # (v5e/v6e: 128 MiB physical -> ~96 MiB; v7x: 64 MiB physical -> 48 MiB).
    try:
        cap = int(pltpu.get_tpu_info().vmem_capacity_bytes)
    except Exception:
        cap = 128 * 1024 * 1024
    return min(cap * 3 // 4, 100 * 1024 * 1024)


def mamba_layer_apply(x, packed, *, l_chunk=None, vmem_limit_bytes=None,
                      single_buffer_weights=False, scan_dtype=jnp.bfloat16):
    """One Mamba layer + residual as a single pipelined Pallas kernel."""
    B, L, Dm = x.shape
    (w_in_x, w_in_z, w_conv, b_conv, w_xbc, w_dtp, b_dt, neg_a, d_skip,
     w_out) = packed
    d_conv, d_inner = w_conv.shape
    d_state = neg_a.shape[0]
    assert d_conv >= 2, "kernel assumes d_conv >= 2 (standard Mamba uses 4)"

    Lc = _choose_chunk(L, l_chunk)
    assert L % Lc == 0 and Lc >= d_conv - 1
    n_l = L // Lc

    if vmem_limit_bytes is None:
        vmem_limit_bytes = _default_vmem_limit_bytes()

    act_spec = pl.BlockSpec((None, Lc, Dm), lambda b, l: (b, l, 0))

    return pl.pallas_call(
        mamba_layer_kernel,
        out_shape=jax.ShapeDtypeStruct((B, L, Dm), jnp.float32),
        grid=(B, n_l),
        in_specs=[act_spec] + [_weight_spec(w, single_buffer_weights)
                               for w in packed],
        out_specs=pl.BlockSpec((None, Lc, Dm), lambda b, l: (b, l, 0)),
        scratch_shapes=[
            pltpu.VMEM((d_state, d_inner), jnp.float32),       # h   (carried, f32)
            pltpu.VMEM((d_conv - 1, d_inner), jnp.float32),    # conv tail (carried)
            pltpu.VMEM((Lc, d_state, d_inner), scan_dtype),    # exp(dt*A)   (bf16)
            pltpu.VMEM((Lc, d_state, d_inner), scan_dtype),    # dBx -> h traj (bf16)
        ],
        compiler_params=pltpu.CompilerParams(
            dimension_semantics=("parallel", "arbitrary"),
            vmem_limit_bytes=vmem_limit_bytes,
        ),
    )(x, *packed)


def mamba_stack(x, packed_blocks, **kw):
    # MambaBlock.forward: for each block, x = Mamba_i(x) + x (residual fused in-kernel).
    for p in packed_blocks:
        x = mamba_layer_apply(x, p, **kw)
    return x


# ----------------------------------------------------------------------------
# Parameters (synthetic, PyTorch-equivalent layouts, pre-transposed for x @ W)
# ----------------------------------------------------------------------------
def init_mamba_params(key, d_model, d_state, d_conv, expand):
    d_inner = expand * d_model
    dt_rank = math.ceil(d_model / 16)
    ks = jax.random.split(key, 5)
    s = 0.05
    w_in = jax.random.normal(ks[0], (d_model, 2 * d_inner), jnp.float32) * s
    w_conv = jax.random.normal(ks[1], (d_conv, d_inner), jnp.float32) * s
    b_conv = jnp.zeros((1, d_inner), jnp.float32)
    w_xp = jax.random.normal(ks[2], (d_inner, dt_rank + 2 * d_state), jnp.float32) * s
    w_dt = jax.random.normal(ks[3], (dt_rank, d_inner), jnp.float32) * s
    b_dt = jnp.full((1, d_inner), 0.1, jnp.float32)
    # S4D-real init: A[n, :] = n+1  ->  A_log = log(A), stored (d_state, d_inner)
    a_log = jnp.log(jnp.broadcast_to(
        jnp.arange(1, d_state + 1, dtype=jnp.float32)[:, None], (d_state, d_inner)))
    d_skip = jnp.ones((1, d_inner), jnp.float32)
    w_out = jax.random.normal(ks[4], (d_inner, d_model), jnp.float32) * s
    return (w_in, w_conv, b_conv, w_xp, w_dt, b_dt, a_log, d_skip, w_out)


def pack_params(raw):
    """Split/fuse/pad/cast raw (PyTorch-layout) params into the kernel layout."""
    (w_in, w_conv, b_conv, w_xp, w_dt, b_dt, a_log, d_skip, w_out) = raw
    dt_rank, d_inner = w_dt.shape
    d_state = a_log.shape[0]
    mm = MATMUL_DTYPE
    w_in_x = w_in[:, :d_inner].astype(mm)
    w_in_z = w_in[:, d_inner:].astype(mm)

    # Fused x_proj: one lane-dense matmul over [dt (padded to 128-mult) | B | C | pad].
    dt_pad = _round_up(dt_rank, 128)
    n_cols = _round_up(dt_pad + 2 * d_state, 128)
    w_xbc = jnp.zeros((d_inner, n_cols), jnp.float32)
    w_xbc = w_xbc.at[:, :dt_rank].set(w_xp[:, :dt_rank])
    w_xbc = w_xbc.at[:, dt_pad:dt_pad + 2 * d_state].set(w_xp[:, dt_rank:])
    w_xbc = w_xbc.astype(mm)

    # dt_proj with rows zero-padded to dt_pad so the kernel's K is lane-aligned.
    w_dtp = jnp.zeros((dt_pad, d_inner), jnp.float32)
    w_dtp = w_dtp.at[:dt_rank, :].set(w_dt).astype(mm)

    neg_a = -jnp.exp(a_log)   # hoist A = -exp(A_log) out of every grid step
    return (w_in_x, w_in_z, w_conv, b_conv, w_xbc, w_dtp, b_dt, neg_a,
            d_skip, w_out.astype(mm))


# ----------------------------------------------------------------------------
# Pure-JAX f32 reference (mirrors the PyTorch MambaBlock forward)
# ----------------------------------------------------------------------------
def mamba_layer_ref(x, raw):
    (w_in, w_conv, b_conv, w_xp, w_dt, b_dt, a_log, d_skip, w_out) = raw
    Bn, L, _ = x.shape
    d_conv, d_inner = w_conv.shape
    dt_rank = w_dt.shape[0]
    d_state = a_log.shape[0]

    xz = x @ w_in
    xi, z = xz[..., :d_inner], xz[..., d_inner:]

    xpad = jnp.pad(xi, ((0, 0), (d_conv - 1, 0), (0, 0)))
    conv = b_conv[None, :, :]
    for k in range(d_conv):
        conv = conv + w_conv[k] * xpad[:, k:k + L, :]
    xc = conv * jax.nn.sigmoid(conv)

    dbc = xc @ w_xp
    dt_lin = dbc[..., :dt_rank] @ w_dt + b_dt[None, :, :]
    dt = jnp.where(dt_lin > 20.0, dt_lin,
                   jnp.log(1.0 + jnp.exp(jnp.minimum(dt_lin, 20.0))))
    Bm = dbc[..., dt_rank:dt_rank + d_state]
    Cm = dbc[..., dt_rank + d_state:]

    A = -jnp.exp(a_log)                                    # (S, Di)

    def step(h, ins):
        dt_t, x_t, B_t, C_t = ins
        dA = jnp.exp(dt_t[:, None, :] * A[None, :, :])
        h = dA * h + dt_t[:, None, :] * B_t[:, :, None] * x_t[:, None, :]
        return h, jnp.sum(h * C_t[:, :, None], axis=1)

    h0 = jnp.zeros((Bn, d_state, d_inner), jnp.float32)
    _, ys = lax.scan(step, h0, (jnp.swapaxes(dt, 0, 1), jnp.swapaxes(xc, 0, 1),
                                jnp.swapaxes(Bm, 0, 1), jnp.swapaxes(Cm, 0, 1)))
    y = jnp.swapaxes(ys, 0, 1)
    y = y + d_skip[None, :, :] * xc
    y = y * (z * jax.nn.sigmoid(z))
    return y @ w_out + x


def mamba_stack_ref(x, raw_blocks):
    for p in raw_blocks:
        x = mamba_layer_ref(x, p)
    return x


if __name__ == "__main__":
    cfg = {"d_model": 32, "d_state": 4, "d_conv": 4, "expand": 2, "n_blocks": 2}

    key = jax.random.PRNGKey(0)
    kx, kx2, kp = jax.random.split(key, 3)

    raw_blocks = [
        init_mamba_params(k, cfg["d_model"], cfg["d_state"], cfg["d_conv"],
                          cfg["expand"])
        for k in jax.random.split(kp, cfg["n_blocks"])
    ]
    packed_blocks = [pack_params(p) for p in raw_blocks]

    # Test 1: batch=2, seq=8 (single L-chunk per batch row).
    x1 = jax.random.normal(kx, (2, 8, cfg["d_model"]), jnp.float32)
    out1 = jax.block_until_ready(mamba_stack(x1, packed_blocks))
    assert out1.shape == x1.shape and out1.dtype == jnp.float32
    assert bool(jnp.all(jnp.isfinite(out1)))
    err1 = float(jnp.max(jnp.abs(out1 - mamba_stack_ref(x1, raw_blocks))))
    assert err1 < 5e-2, f"mismatch vs reference: {err1}"

    # Test 2: batch=2, seq=16 chunked as Lc=8 -> exercises the carried scan
    # state h and the causal-conv tail across L-chunk grid steps.
    x2 = jax.random.normal(kx2, (2, 16, cfg["d_model"]), jnp.float32)
    out2 = jax.block_until_ready(mamba_stack(x2, packed_blocks, l_chunk=8))
    assert bool(jnp.all(jnp.isfinite(out2)))
    err2 = float(jnp.max(jnp.abs(out2 - mamba_stack_ref(x2, raw_blocks))))
    assert err2 < 5e-2, f"chunked mismatch vs reference: {err2}"

    print("KERNEL_OK")
</pallas_src>

<mosaic_0001>
module attributes {stable_mosaic.version = 11 : i64} {
  func.func @mamba_layer_kernel(%arg0: i32, %arg1: i32, %arg2: memref<1x8x32xf32, #tpu.memory_space<vmem>>, %arg3: memref<32x64xbf16, #tpu.memory_space<vmem>>, %arg4: memref<32x64xbf16, #tpu.memory_space<vmem>>, %arg5: memref<4x64xf32, #tpu.memory_space<vmem>>, %arg6: memref<1x64xf32, #tpu.memory_space<vmem>>, %arg7: memref<64x256xbf16, #tpu.memory_space<vmem>>, %arg8: memref<128x64xbf16, #tpu.memory_space<vmem>>, %arg9: memref<1x64xf32, #tpu.memory_space<vmem>>, %arg10: memref<4x64xf32, #tpu.memory_space<vmem>>, %arg11: memref<1x64xf32, #tpu.memory_space<vmem>>, %arg12: memref<64x32xbf16, #tpu.memory_space<vmem>>, %arg13: memref<1x8x32xf32, #tpu.memory_space<vmem>>, %arg14: memref<4x64xf32, #tpu.memory_space<vmem>>, %arg15: memref<3x64xf32, #tpu.memory_space<vmem>>, %arg16: memref<8x4x64xbf16, #tpu.memory_space<vmem>>, %arg17: memref<8x4x64xbf16, #tpu.memory_space<vmem>>) attributes {dimension_semantics = [#tpu.dimension_semantics<parallel>, #tpu.dimension_semantics<arbitrary>], iteration_bounds = array<i64: 2, 1>, scalar_prefetch = 0 : i64, scratch_operands = 4 : i64, tpu.core_type = #tpu.core_type<tc>, window_params = [{transform_indices = @transform_0, window_bounds = array<i64: 1, 8, 32>}, {pipeline_mode = #tpu.pipeline_mode<synchronous>, transform_indices = @transform_1, window_bounds = array<i64: 32, 64>}, {pipeline_mode = #tpu.pipeline_mode<synchronous>, transform_indices = @transform_2, window_bounds = array<i64: 32, 64>}, {pipeline_mode = #tpu.pipeline_mode<synchronous>, transform_indices = @transform_3, window_bounds = array<i64: 4, 64>}, {pipeline_mode = #tpu.pipeline_mode<synchronous>, transform_indices = @transform_4, window_bounds = array<i64: 1, 64>}, {pipeline_mode = #tpu.pipeline_mode<synchronous>, transform_indices = @transform_5, window_bounds = array<i64: 64, 256>}, {pipeline_mode = #tpu.pipeline_mode<synchronous>, transform_indices = @transform_6, window_bounds = array<i64: 128, 64>}, {pipeline_mode = #tpu.pipeline_mode<synchronous>, transform_indices = @transform_7, window_bounds = array<i64: 1, 64>}, {pipeline_mode = #tpu.pipeline_mode<synchronous>, transform_indices = @transform_8, window_bounds = array<i64: 4, 64>}, {pipeline_mode = #tpu.pipeline_mode<synchronous>, transform_indices = @transform_9, window_bounds = array<i64: 1, 64>}, {pipeline_mode = #tpu.pipeline_mode<synchronous>, transform_indices = @transform_10, window_bounds = array<i64: 64, 32>}, {transform_indices = @transform_11, window_bounds = array<i64: 1, 8, 32>}]} {
    %c0_i32 = arith.constant 0 : i32
    %0 = arith.cmpi eq, %arg1, %c0_i32 : i32
    %1 = arith.extui %0 : i1 to i32
    %c0_i32_0 = arith.constant 0 : i32
    %2 = arith.cmpi ne, %1, %c0_i32_0 : i32
    scf.if %2 {
      %cst_105 = arith.constant 0.000000e+00 : f32
      %231 = vector.broadcast %cst_105 : f32 to vector<4x64xf32>
      %c0_106 = arith.constant 0 : index
      %c0_107 = arith.constant 0 : index
      %232 = vector.load %arg14[%c0_106, %c0_107] : memref<4x64xf32, #tpu.memory_space<vmem>>, vector<4x64xf32>
      tpu.vector_store %arg14[%c0_106, %c0_107], %231 {strides = array<i32>} : memref<4x64xf32, #tpu.memory_space<vmem>>, vector<4x64xf32>,
      %cst_108 = arith.constant 0.000000e+00 : f32
      %233 = vector.broadcast %cst_108 : f32 to vector<3x64xf32>
      %c0_109 = arith.constant 0 : index
      %c0_110 = arith.constant 0 : index
      %234 = vector.load %arg15[%c0_109, %c0_110] : memref<3x64xf32, #tpu.memory_space<vmem>>, vector<3x64xf32>
      tpu.vector_store %arg15[%c0_109, %c0_110], %233 {strides = array<i32>} : memref<3x64xf32, #tpu.memory_space<vmem>>, vector<3x64xf32>,
    } else {
    }
    %c0 = arith.constant 0 : index
    %c0_1 = arith.constant 0 : index
    %c0_2 = arith.constant 0 : index
    %3 = vector.load %arg2[%c0, %c0_1, %c0_2] : memref<1x8x32xf32, #tpu.memory_space<vmem>>, vector<1x8x32xf32>
    %4 = vector.shape_cast %3 : vector<1x8x32xf32> to vector<8x32xf32>
    %5 = arith.truncf %4 : vector<8x32xf32> to vector<8x32xbf16>
    %c0_3 = arith.constant 0 : index
    %c0_4 = arith.constant 0 : index
    %6 = vector.load %arg3[%c0_3, %c0_4] : memref<32x64xbf16, #tpu.memory_space<vmem>>, vector<32x64xbf16>
    %cst = arith.constant dense<0.000000e+00> : vector<8x64xf32>
    %7 = tpu.matmul %5, %6, %cst {dimension_numbers = #tpu.dot_dimension_numbers<[1], [0], [0], [1], [0, 0, 1, 1], [], []>} : vector<8x32xbf16>, vector<32x64xbf16>, vector<8x64xf32> -> vector<8x64xf32>
    %c0_5 = arith.constant 0 : index
    %c0_6 = arith.constant 0 : index
    %8 = vector.load %arg4[%c0_5, %c0_6] : memref<32x64xbf16, #tpu.memory_space<vmem>>, vector<32x64xbf16>
    %cst_7 = arith.constant dense<0.000000e+00> : vector<8x64xf32>
    %9 = tpu.matmul %5, %8, %cst_7 {dimension_numbers = #tpu.dot_dimension_numbers<[1], [0], [0], [1], [0, 0, 1, 1], [], []>} : vector<8x32xbf16>, vector<32x64xbf16>, vector<8x64xf32> -> vector<8x64xf32>
    %c0_8 = arith.constant 0 : index
    %c0_9 = arith.constant 0 : index
    %10 = vector.load %arg15[%c0_8, %c0_9] : memref<3x64xf32, #tpu.memory_space<vmem>>, vector<3x64xf32>
    %11 = tpu.concatenate %10, %7 in 0 : vector<3x64xf32>, vector<8x64xf32> -> vector<11x64xf32>
    %c0_10 = arith.constant 0 : index
    %c0_11 = arith.constant 0 : index
    %12 = vector.load %arg5[%c0_10, %c0_11] : memref<4x64xf32, #tpu.memory_space<vmem>>, vector<4x64xf32>
    %cst_12 = arith.constant 0.000000e+00 : f32
    %13 = vector.broadcast %cst_12 : f32 to vector<8x64xf32>
    %c0_13 = arith.constant 0 : index
    %c0_14 = arith.constant 0 : index
    %14 = vector.load %arg6[%c0_13, %c0_14] : memref<1x64xf32, #tpu.memory_space<vmem>>, vector<1x64xf32>
    %15 = vector.broadcast %14 : vector<1x64xf32> to vector<8x64xf32>
    %16 = arith.addf %13, %15 : vector<8x64xf32>
    %17 = vector.extract_strided_slice %12 {offsets = [0, 0], sizes = [1, 64], strides = [1, 1]} : vector<4x64xf32> to vector<1x64xf32>
    %18 = vector.extract_strided_slice %11 {offsets = [0, 0], sizes = [8, 64], strides = [1, 1]} : vector<11x64xf32> to vector<8x64xf32>
    %19 = vector.broadcast %17 : vector<1x64xf32> to vector<8x64xf32>
    %20 = arith.mulf %19, %18 : vector<8x64xf32>
    %21 = arith.addf %16, %20 : vector<8x64xf32>
    %22 = vector.extract_strided_slice %12 {offsets = [1, 0], sizes = [1, 64], strides = [1, 1]} : vector<4x64xf32> to vector<1x64xf32>
    %23 = vector.extract_strided_slice %11 {offsets = [1, 0], sizes = [8, 64], strides = [1, 1]} : vector<11x64xf32> to vector<8x64xf32>
    %24 = vector.broadcast %22 : vector<1x64xf32> to vector<8x64xf32>
    %25 = arith.mulf %24, %23 : vector<8x64xf32>
    %26 = arith.addf %21, %25 : vector<8x64xf32>
    %27 = vector.extract_strided_slice %12 {offsets = [2, 0], sizes = [1, 64], strides = [1, 1]} : vector<4x64xf32> to vector<1x64xf32>
    %28 = vector.extract_strided_slice %11 {offsets = [2, 0], sizes = [8, 64], strides = [1, 1]} : vector<11x64xf32> to vector<8x64xf32>
    %29 = vector.broadcast %27 : vector<1x64xf32> to vector<8x64xf32>
    %30 = arith.mulf %29, %28 : vector<8x64xf32>
    %31 = arith.addf %26, %30 : vector<8x64xf32>
    %32 = vector.extract_strided_slice %12 {offsets = [3, 0], sizes = [1, 64], strides = [1, 1]} : vector<4x64xf32> to vector<1x64xf32>
    %33 = vector.extract_strided_slice %11 {offsets = [3, 0], sizes = [8, 64], strides = [1, 1]} : vector<11x64xf32> to vector<8x64xf32>
    %34 = vector.broadcast %32 : vector<1x64xf32> to vector<8x64xf32>
    %35 = arith.mulf %34, %33 : vector<8x64xf32>
    %36 = arith.addf %31, %35 : vector<8x64xf32>
    %cst_15 = arith.constant 0.000000e+00 : f32
    %37 = vector.broadcast %cst_15 : f32 to vector<8x64xf32>
    %38 = arith.subf %37, %36 : vector<8x64xf32>
    %39 = math.exp %38 : vector<8x64xf32>
    %cst_16 = arith.constant 1.000000e+00 : f32
    %40 = vector.broadcast %cst_16 : f32 to vector<8x64xf32>
    %41 = arith.addf %40, %39 : vector<8x64xf32>
    %42 = tpu.reciprocal %41 {approx = true} : vector<8x64xf32> -> vector<8x64xf32>
    %43 = arith.mulf %36, %42 : vector<8x64xf32>
    %44 = vector.extract_strided_slice %7 {offsets = [5, 0], sizes = [3, 64], strides = [1, 1]} : vector<8x64xf32> to vector<3x64xf32>
    %c0_17 = arith.constant 0 : index
    %c0_18 = arith.constant 0 : index
    %45 = vector.load %arg15[%c0_17, %c0_18] : memref<3x64xf32, #tpu.memory_space<vmem>>, vector<3x64xf32>
    tpu.vector_store %arg15[%c0_17, %c0_18], %44 {strides = array<i32>} : memref<3x64xf32, #tpu.memory_space<vmem>>, vector<3x64xf32>,
    %46 = arith.truncf %43 : vector<8x64xf32> to vector<8x64xbf16>
    %c0_19 = arith.constant 0 : index
    %c0_20 = arith.constant 0 : index
    %47 = vector.load %arg7[%c0_19, %c0_20] : memref<64x256xbf16, #tpu.memory_space<vmem>>, vector<64x256xbf16>
    %cst_21 = arith.constant dense<0.000000e+00> : vector<8x256xf32>
    %48 = tpu.matmul %46, %47, %cst_21 {dimension_numbers = #tpu.dot_dimension_numbers<[1], [0], [0], [1], [0, 0, 1, 1], [], []>} : vector<8x64xbf16>, vector<64x256xbf16>, vector<8x256xf32> -> vector<8x256xf32>
    %49 = vector.extract_strided_slice %48 {offsets = [0, 0], sizes = [8, 128], strides = [1, 1]} : vector<8x256xf32> to vector<8x128xf32>
    %50 = arith.truncf %49 : vector<8x128xf32> to vector<8x128xbf16>
    %c0_22 = arith.constant 0 : index
    %c0_23 = arith.constant 0 : index
    %51 = vector.load %arg8[%c0_22, %c0_23] : memref<128x64xbf16, #tpu.memory_space<vmem>>, vector<128x64xbf16>
    %cst_24 = arith.constant dense<0.000000e+00> : vector<8x64xf32>
    %52 = tpu.matmul %50, %51, %cst_24 {dimension_numbers = #tpu.dot_dimension_numbers<[1], [0], [0], [1], [0, 0, 1, 1], [], []>} : vector<8x128xbf16>, vector<128x64xbf16>, vector<8x64xf32> -> vector<8x64xf32>
    %c0_25 = arith.constant 0 : index
    %c0_26 = arith.constant 0 : index
    %53 = vector.load %arg9[%c0_25, %c0_26] : memref<1x64xf32, #tpu.memory_space<vmem>>, vector<1x64xf32>
    %54 = vector.broadcast %53 : vector<1x64xf32> to vector<8x64xf32>
    %55 = arith.addf %52, %54 : vector<8x64xf32>
    %cst_27 = arith.constant 2.000000e+01 : f32
    %56 = vector.broadcast %cst_27 : f32 to vector<8x64xf32>
    %57 = arith.cmpf ogt, %55, %56 : vector<8x64xf32>
    %cst_28 = arith.constant 2.000000e+01 : f32
    %58 = vector.broadcast %cst_28 : f32 to vector<8x64xf32>
    %59 = arith.minimumf %55, %58 : vector<8x64xf32>
    %60 = math.exp %59 : vector<8x64xf32>
    %cst_29 = arith.constant 1.000000e+00 : f32
    %61 = vector.broadcast %cst_29 : f32 to vector<8x64xf32>
    %62 = arith.addf %61, %60 : vector<8x64xf32>
    %63 = math.log %62 : vector<8x64xf32>
    %64 = arith.select %57, %55, %63 : vector<8x64xi1>, vector<8x64xf32>
    %65 = vector.extract_strided_slice %48 {offsets = [0, 128], sizes = [8, 4], strides = [1, 1]} : vector<8x256xf32> to vector<8x4xf32>
    %66 = vector.extract_strided_slice %48 {offsets = [0, 132], sizes = [8, 4], strides = [1, 1]} : vector<8x256xf32> to vector<8x4xf32>
    %c0_30 = arith.constant 0 : index
    %c0_31 = arith.constant 0 : index
    %67 = vector.load %arg10[%c0_30, %c0_31] : memref<4x64xf32, #tpu.memory_space<vmem>>, vector<4x64xf32>
    %68 = vector.shape_cast %64 : vector<8x64xf32> to vector<8x1x64xf32>
    %69 = vector.shape_cast %67 : vector<4x64xf32> to vector<1x4x64xf32>
    %70 = vector.broadcast %68 : vector<8x1x64xf32> to vector<8x4x64xf32>
    %71 = vector.broadcast %69 : vector<1x4x64xf32> to vector<8x4x64xf32>
    %72 = arith.mulf %70, %71 : vector<8x4x64xf32>
    %73 = math.exp %72 : vector<8x4x64xf32>
    %74 = arith.truncf %73 : vector<8x4x64xf32> to vector<8x4x64xbf16>
    %c0_32 = arith.constant 0 : index
    %c0_33 = arith.constant 0 : index
    %c0_34 = arith.constant 0 : index
    %75 = vector.load %arg16[%c0_32, %c0_33, %c0_34] : memref<8x4x64xbf16, #tpu.memory_space<vmem>>, vector<8x4x64xbf16>
    tpu.vector_store %arg16[%c0_32, %c0_33, %c0_34], %74 {strides = array<i32>} : memref<8x4x64xbf16, #tpu.memory_space<vmem>>, vector<8x4x64xbf16>,
    %76 = arith.mulf %64, %43 : vector<8x64xf32>
    %77 = vector.shape_cast %76 : vector<8x64xf32> to vector<8x1x64xf32>
    %78 = vector.shape_cast %65 : vector<8x4xf32> to vector<8x4x1xf32>
    %79 = vector.broadcast %77 : vector<8x1x64xf32> to vector<8x4x64xf32>
    %80 = vector.broadcast %78 : vector<8x4x1xf32> to vector<8x4x64xf32>
    %81 = arith.mulf %79, %80 : vector<8x4x64xf32>
    %82 = arith.truncf %81 : vector<8x4x64xf32> to vector<8x4x64xbf16>
    %c0_35 = arith.constant 0 : index
    %c0_36 = arith.constant 0 : index
    %c0_37 = arith.constant 0 : index
    %83 = vector.load %arg17[%c0_35, %c0_36, %c0_37] : memref<8x4x64xbf16, #tpu.memory_space<vmem>>, vector<8x4x64xbf16>
    tpu.vector_store %arg17[%c0_35, %c0_36, %c0_37], %82 {strides = array<i32>} : memref<8x4x64xbf16, #tpu.memory_space<vmem>>, vector<8x4x64xbf16>,
    %c0_38 = arith.constant 0 : index
    %c0_39 = arith.constant 0 : index
    %84 = vector.load %arg14[%c0_38, %c0_39] : memref<4x64xf32, #tpu.memory_space<vmem>>, vector<4x64xf32>
    %c0_i32_40 = arith.constant 0 : i32
    %85 = arith.index_cast %c0_i32_40 : i32 to index
    %c0_41 = arith.constant 0 : index
    %c0_42 = arith.constant 0 : index
    %86 = vector.load %arg16[%85, %c0_41, %c0_42] : memref<8x4x64xbf16, #tpu.memory_space<vmem>>, vector<1x4x64xbf16>
    %87 = vector.shape_cast %86 : vector<1x4x64xbf16> to vector<4x64xbf16>
    %88 = arith.extf %87 : vector<4x64xbf16> to vector<4x64xf32>
    %89 = arith.mulf %88, %84 : vector<4x64xf32>
    %90 = arith.index_cast %c0_i32_40 : i32 to index
    %c0_43 = arith.constant 0 : index
    %c0_44 = arith.constant 0 : index
    %91 = vector.load %arg17[%90, %c0_43, %c0_44] : memref<8x4x64xbf16, #tpu.memory_space<vmem>>, vector<1x4x64xbf16>
    %92 = vector.shape_cast %91 : vector<1x4x64xbf16> to vector<4x64xbf16>
    %93 = arith.extf %92 : vector<4x64xbf16> to vector<4x64xf32>
    %94 = arith.addf %89, %93 : vector<4x64xf32>
    %95 = arith.truncf %94 : vector<4x64xf32> to vector<4x64xbf16>
    %96 = arith.index_cast %c0_i32_40 : i32 to index
    %c0_45 = arith.constant 0 : index
    %c0_46 = arith.constant 0 : index
    %97 = vector.load %arg17[%96, %c0_45, %c0_46] : memref<8x4x64xbf16, #tpu.memory_space<vmem>>, vector<1x4x64xbf16>
    %98 = vector.shape_cast %97 : vector<1x4x64xbf16> to vector<4x64xbf16>
    %99 = vector.shape_cast %95 : vector<4x64xbf16> to vector<1x4x64xbf16>
    tpu.vector_store %arg17[%96, %c0_45, %c0_46], %99 {strides = array<i32>} : memref<8x4x64xbf16, #tpu.memory_space<vmem>>, vector<1x4x64xbf16>,
    %c1_i32 = arith.constant 1 : i32
    %100 = arith.index_cast %c1_i32 : i32 to index
    %c0_47 = arith.constant 0 : index
    %c0_48 = arith.constant 0 : index
    %101 = vector.load %arg16[%100, %c0_47, %c0_48] : memref<8x4x64xbf16, #tpu.memory_space<vmem>>, vector<1x4x64xbf16>
    %102 = vector.shape_cast %101 : vector<1x4x64xbf16> to vector<4x64xbf16>
    %103 = arith.extf %102 : vector<4x64xbf16> to vector<4x64xf32>
    %104 = arith.mulf %103, %94 : vector<4x64xf32>
    %105 = arith.index_cast %c1_i32 : i32 to index
    %c0_49 = arith.constant 0 : index
    %c0_50 = arith.constant 0 : index
    %106 = vector.load %arg17[%105, %c0_49, %c0_50] : memref<8x4x64xbf16, #tpu.memory_space<vmem>>, vector<1x4x64xbf16>
    %107 = vector.shape_cast %106 : vector<1x4x64xbf16> to vector<4x64xbf16>
    %108 = arith.extf %107 : vector<4x64xbf16> to vector<4x64xf32>
    %109 = arith.addf %104, %108 : vector<4x64xf32>
    %110 = arith.truncf %109 : vector<4x64xf32> to vector<4x64xbf16>
    %111 = arith.index_cast %c1_i32 : i32 to index
    %c0_51 = arith.constant 0 : index
    %c0_52 = arith.constant 0 : index
    %112 = vector.load %arg17[%111, %c0_51, %c0_52] : memref<8x4x64xbf16, #tpu.memory_space<vmem>>, vector<1x4x64xbf16>
    %113 = vector.shape_cast %112 : vector<1x4x64xbf16> to vector<4x64xbf16>
    %114 = vector.shape_cast %110 : vector<4x64xbf16> to vector<1x4x64xbf16>
    tpu.vector_store %arg17[%111, %c0_51, %c0_52], %114 {strides = array<i32>} : memref<8x4x64xbf16, #tpu.memory_space<vmem>>, vector<1x4x64xbf16>,
    %c2_i32 = arith.constant 2 : i32
    %115 = arith.index_cast %c2_i32 : i32 to index
    %c0_53 = arith.constant 0 : index
    %c0_54 = arith.constant 0 : index
    %116 = vector.load %arg16[%115, %c0_53, %c0_54] : memref<8x4x64xbf16, #tpu.memory_space<vmem>>, vector<1x4x64xbf16>
    %117 = vector.shape_cast %116 : vector<1x4x64xbf16> to vector<4x64xbf16>
    %118 = arith.extf %117 : vector<4x64xbf16> to vector<4x64xf32>
    %119 = arith.mulf %118, %109 : vector<4x64xf32>
    %120 = arith.index_cast %c2_i32 : i32 to index
    %c0_55 = arith.constant 0 : index
    %c0_56 = arith.constant 0 : index
    %121 = vector.load %arg17[%120, %c0_55, %c0_56] : memref<8x4x64xbf16, #tpu.memory_space<vmem>>, vector<1x4x64xbf16>
    %122 = vector.shape_cast %121 : vector<1x4x64xbf16> to vector<4x64xbf16>
    %123 = arith.extf %122 : vector<4x64xbf16> to vector<4x64xf32>
    %124 = arith.addf %119, %123 : vector<4x64xf32>
    %125 = arith.truncf %124 : vector<4x64xf32> to vector<4x64xbf16>
    %126 = arith.index_cast %c2_i32 : i32 to index
    %c0_57 = arith.constant 0 : index
    %c0_58 = arith.constant 0 : index
    %127 = vector.load %arg17[%126, %c0_57, %c0_58] : memref<8x4x64xbf16, #tpu.memory_space<vmem>>, vector<1x4x64xbf16>
    %128 = vector.shape_cast %127 : vector<1x4x64xbf16> to vector<4x64xbf16>
    %129 = vector.shape_cast %125 : vector<4x64xbf16> to vector<1x4x64xbf16>
    tpu.vector_store %arg17[%126, %c0_57, %c0_58], %129 {strides = array<i32>} : memref<8x4x64xbf16, #tpu.memory_space<vmem>>, vector<1x4x64xbf16>,
    %c3_i32 = arith.constant 3 : i32
    %130 = arith.index_cast %c3_i32 : i32 to index
    %c0_59 = arith.constant 0 : index
    %c0_60 = arith.constant 0 : index
    %131 = vector.load %arg16[%130, %c0_59, %c0_60] : memref<8x4x64xbf16, #tpu.memory_space<vmem>>, vector<1x4x64xbf16>
    %132 = vector.shape_cast %131 : vector<1x4x64xbf16> to vector<4x64xbf16>
    %133 = arith.extf %132 : vector<4x64xbf16> to vector<4x64xf32>
    %134 = arith.mulf %133, %124 : vector<4x64xf32>
    %135 = arith.index_cast %c3_i32 : i32 to index
    %c0_61 = arith.constant 0 : index
    %c0_62 = arith.constant 0 : index
    %136 = vector.load %arg17[%135, %c0_61, %c0_62] : memref<8x4x64xbf16, #tpu.memory_space<vmem>>, vector<1x4x64xbf16>
    %137 = vector.shape_cast %136 : vector<1x4x64xbf16> to vector<4x64xbf16>
    %138 = arith.extf %137 : vector<4x64xbf16> to vector<4x64xf32>
    %139 = arith.addf %134, %138 : vector<4x64xf32>
    %140 = arith.truncf %139 : vector<4x64xf32> to vector<4x64xbf16>
    %141 = arith.index_cast %c3_i32 : i32 to index
    %c0_63 = arith.constant 0 : index
    %c0_64 = arith.constant 0 : index
    %142 = vector.load %arg17[%141, %c0_63, %c0_64] : memref<8x4x64xbf16, #tpu.memory_space<vmem>>, vector<1x4x64xbf16>
    %143 = vector.shape_cast %142 : vector<1x4x64xbf16> to vector<4x64xbf16>
    %144 = vector.shape_cast %140 : vector<4x64xbf16> to vector<1x4x64xbf16>
    tpu.vector_store %arg17[%141, %c0_63, %c0_64], %144 {strides = array<i32>} : memref<8x4x64xbf16, #tpu.memory_space<vmem>>, vector<1x4x64xbf16>,
    %c4_i32 = arith.constant 4 : i32
    %145 = arith.index_cast %c4_i32 : i32 to index
    %c0_65 = arith.constant 0 : index
    %c0_66 = arith.constant 0 : index
    %146 = vector.load %arg16[%145, %c0_65, %c0_66] : memref<8x4x64xbf16, #tpu.memory_space<vmem>>, vector<1x4x64xbf16>
    %147 = vector.shape_cast %146 : vector<1x4x64xbf16> to vector<4x64xbf16>
    %148 = arith.extf %147 : vector<4x64xbf16> to vector<4x64xf32>
    %149 = arith.mulf %148, %139 : vector<4x64xf32>
    %150 = arith.index_cast %c4_i32 : i32 to index
    %c0_67 = arith.constant 0 : index
    %c0_68 = arith.constant 0 : index
    %151 = vector.load %arg17[%150, %c0_67, %c0_68] : memref<8x4x64xbf16, #tpu.memory_space<vmem>>, vector<1x4x64xbf16>
    %152 = vector.shape_cast %151 : vector<1x4x64xbf16> to vector<4x64xbf16>
    %153 = arith.extf %152 : vector<4x64xbf16> to vector<4x64xf32>
    %154 = arith.addf %149, %153 : vector<4x64xf32>
    %155 = arith.truncf %154 : vector<4x64xf32> to vector<4x64xbf16>
    %156 = arith.index_cast %c4_i32 : i32 to index
    %c0_69 = arith.constant 0 : index
    %c0_70 = arith.constant 0 : index
    %157 = vector.load %arg17[%156, %c0_69, %c0_70] : memref<8x4x64xbf16, #tpu.memory_space<vmem>>, vector<1x4x64xbf16>
    %158 = vector.shape_cast %157 : vector<1x4x64xbf16> to vector<4x64xbf16>
    %159 = vector.shape_cast %155 : vector<4x64xbf16> to vector<1x4x64xbf16>
    tpu.vector_store %arg17[%156, %c0_69, %c0_70], %159 {strides = array<i32>} : memref<8x4x64xbf16, #tpu.memory_space<vmem>>, vector<1x4x64xbf16>,
    %c5_i32 = arith.constant 5 : i32
    %160 = arith.index_cast %c5_i32 : i32 to index
    %c0_71 = arith.constant 0 : index
    %c0_72 = arith.constant 0 : index
    %161 = vector.load %arg16[%160, %c0_71, %c0_72] : memref<8x4x64xbf16, #tpu.memory_space<vmem>>, vector<1x4x64xbf16>
    %162 = vector.shape_cast %161 : vector<1x4x64xbf16> to vector<4x64xbf16>
    %163 = arith.extf %162 : vector<4x64xbf16> to vector<4x64xf32>
    %164 = arith.mulf %163, %154 : vector<4x64xf32>
    %165 = arith.index_cast %c5_i32 : i32 to index
    %c0_73 = arith.constant 0 : index
    %c0_74 = arith.constant 0 : index
    %166 = vector.load %arg17[%165, %c0_73, %c0_74] : memref<8x4x64xbf16, #tpu.memory_space<vmem>>, vector<1x4x64xbf16>
    %167 = vector.shape_cast %166 : vector<1x4x64xbf16> to vector<4x64xbf16>
    %168 = arith.extf %167 : vector<4x64xbf16> to vector<4x64xf32>
    %169 = arith.addf %164, %168 : vector<4x64xf32>
    %170 = arith.truncf %169 : vector<4x64xf32> to vector<4x64xbf16>
    %171 = arith.index_cast %c5_i32 : i32 to index
    %c0_75 = arith.constant 0 : index
    %c0_76 = arith.constant 0 : index
    %172 = vector.load %arg17[%171, %c0_75, %c0_76] : memref<8x4x64xbf16, #tpu.memory_space<vmem>>, vector<1x4x64xbf16>
    %173 = vector.shape_cast %172 : vector<1x4x64xbf16> to vector<4x64xbf16>
    %174 = vector.shape_cast %170 : vector<4x64xbf16> to vector<1x4x64xbf16>
    tpu.vector_store %arg17[%171, %c0_75, %c0_76], %174 {strides = array<i32>} : memref<8x4x64xbf16, #tpu.memory_space<vmem>>, vector<1x4x64xbf16>,
    %c6_i32 = arith.constant 6 : i32
    %175 = arith.index_cast %c6_i32 : i32 to index
    %c0_77 = arith.constant 0 : index
    %c0_78 = arith.constant 0 : index
    %176 = vector.load %arg16[%175, %c0_77, %c0_78] : memref<8x4x64xbf16, #tpu.memory_space<vmem>>, vector<1x4x64xbf16>
    %177 = vector.shape_cast %176 : vector<1x4x64xbf16> to vector<4x64xbf16>
    %178 = arith.extf %177 : vector<4x64xbf16> to vector<4x64xf32>
    %179 = arith.mulf %178, %169 : vector<4x64xf32>
    %180 = arith.index_cast %c6_i32 : i32 to index
    %c0_79 = arith.constant 0 : index
    %c0_80 = arith.constant 0 : index
    %181 = vector.load %arg17[%180, %c0_79, %c0_80] : memref<8x4x64xbf16, #tpu.memory_space<vmem>>, vector<1x4x64xbf16>
    %182 = vector.shape_cast %181 : vector<1x4x64xbf16> to vector<4x64xbf16>
    %183 = arith.extf %182 : vector<4x64xbf16> to vector<4x64xf32>
    %184 = arith.addf %179, %183 : vector<4x64xf32>
    %185 = arith.truncf %184 : vector<4x64xf32> to vector<4x64xbf16>
    %186 = arith.index_cast %c6_i32 : i32 to index
    %c0_81 = arith.constant 0 : index
    %c0_82 = arith.constant 0 : index
    %187 = vector.load %arg17[%186, %c0_81, %c0_82] : memref<8x4x64xbf16, #tpu.memory_space<vmem>>, vector<1x4x64xbf16>
    %188 = vector.shape_cast %187 : vector<1x4x64xbf16> to vector<4x64xbf16>
    %189 = vector.shape_cast %185 : vector<4x64xbf16> to vector<1x4x64xbf16>
    tpu.vector_store %arg17[%186, %c0_81, %c0_82], %189 {strides = array<i32>} : memref<8x4x64xbf16, #tpu.memory_space<vmem>>, vector<1x4x64xbf16>,
    %c7_i32 = arith.constant 7 : i32
    %190 = arith.index_cast %c7_i32 : i32 to index
    %c0_83 = arith.constant 0 : index
    %c0_84 = arith.constant 0 : index
    %191 = vector.load %arg16[%190, %c0_83, %c0_84] : memref<8x4x64xbf16, #tpu.memory_space<vmem>>, vector<1x4x64xbf16>
    %192 = vector.shape_cast %191 : vector<1x4x64xbf16> to vector<4x64xbf16>
    %193 = arith.extf %192 : vector<4x64xbf16> to vector<4x64xf32>
    %194 = arith.mulf %193, %184 : vector<4x64xf32>
    %195 = arith.index_cast %c7_i32 : i32 to index
    %c0_85 = arith.constant 0 : index
    %c0_86 = arith.constant 0 : index
    %196 = vector.load %arg17[%195, %c0_85, %c0_86] : memref<8x4x64xbf16, #tpu.memory_space<vmem>>, vector<1x4x64xbf16>
    %197 = vector.shape_cast %196 : vector<1x4x64xbf16> to vector<4x64xbf16>
    %198 = arith.extf %197 : vector<4x64xbf16> to vector<4x64xf32>
    %199 = arith.addf %194, %198 : vector<4x64xf32>
    %200 = arith.truncf %199 : vector<4x64xf32> to vector<4x64xbf16>
    %201 = arith.index_cast %c7_i32 : i32 to index
    %c0_87 = arith.constant 0 : index
    %c0_88 = arith.constant 0 : index
    %202 = vector.load %arg17[%201, %c0_87, %c0_88] : memref<8x4x64xbf16, #tpu.memory_space<vmem>>, vector<1x4x64xbf16>
    %203 = vector.shape_cast %202 : vector<1x4x64xbf16> to vector<4x64xbf16>
    %204 = vector.shape_cast %200 : vector<4x64xbf16> to vector<1x4x64xbf16>
    tpu.vector_store %arg17[%201, %c0_87, %c0_88], %204 {strides = array<i32>} : memref<8x4x64xbf16, #tpu.memory_space<vmem>>, vector<1x4x64xbf16>,
    %c8_i32 = arith.constant 8 : i32
    %c0_89 = arith.constant 0 : index
    %c0_90 = arith.constant 0 : index
    %205 = vector.load %arg14[%c0_89, %c0_90] : memref<4x64xf32, #tpu.memory_space<vmem>>, vector<4x64xf32>
    tpu.vector_store %arg14[%c0_89, %c0_90], %199 {strides = array<i32>} : memref<4x64xf32, #tpu.memory_space<vmem>>, vector<4x64xf32>,
    %c0_91 = arith.constant 0 : index
    %c0_92 = arith.constant 0 : index
    %c0_93 = arith.constant 0 : index
    %206 = vector.load %arg17[%c0_91, %c0_92, %c0_93] : memref<8x4x64xbf16, #tpu.memory_space<vmem>>, vector<8x4x64xbf16>
    %207 = arith.extf %206 : vector<8x4x64xbf16> to vector<8x4x64xf32>
    %208 = vector.shape_cast %66 : vector<8x4xf32> to vector<8x4x1xf32>
    %209 = vector.broadcast %208 : vector<8x4x1xf32> to vector<8x4x64xf32>
    %210 = arith.mulf %207, %209 : vector<8x4x64xf32>
    %cst_94 = arith.constant dense<0.000000e+00> : vector<8x64xf32>
    %211 = vector.multi_reduction <add>, %210, %cst_94 [1] : vector<8x4x64xf32> to vector<8x64xf32>
    %c0_95 = arith.constant 0 : index
    %c0_96 = arith.constant 0 : index
    %212 = vector.load %arg11[%c0_95, %c0_96] : memref<1x64xf32, #tpu.memory_space<vmem>>, vector<1x64xf32>
    %213 = vector.broadcast %212 : vector<1x64xf32> to vector<8x64xf32>
    %214 = arith.mulf %213, %43 : vector<8x64xf32>
    %215 = arith.addf %211, %214 : vector<8x64xf32>
    %cst_97 = arith.constant 0.000000e+00 : f32
    %216 = vector.broadcast %cst_97 : f32 to vector<8x64xf32>
    %217 = arith.subf %216, %9 : vector<8x64xf32>
    %218 = math.exp %217 : vector<8x64xf32>
    %cst_98 = arith.constant 1.000000e+00 : f32
    %219 = vector.broadcast %cst_98 : f32 to vector<8x64xf32>
    %220 = arith.addf %219, %218 : vector<8x64xf32>
    %221 = tpu.reciprocal %220 {approx = true} : vector<8x64xf32> -> vector<8x64xf32>
    %222 = arith.mulf %9, %221 : vector<8x64xf32>
    %223 = arith.mulf %215, %222 : vector<8x64xf32>
    %224 = arith.truncf %223 : vector<8x64xf32> to vector<8x64xbf16>
    %c0_99 = arith.constant 0 : index
    %c0_100 = arith.constant 0 : index
    %225 = vector.load %arg12[%c0_99, %c0_100] : memref<64x32xbf16, #tpu.memory_space<vmem>>, vector<64x32xbf16>
    %cst_101 = arith.constant dense<0.000000e+00> : vector<8x32xf32>
    %226 = tpu.matmul %224, %225, %cst_101 {dimension_numbers = #tpu.dot_dimension_numbers<[1], [0], [0], [1], [0, 0, 1, 1], [], []>} : vector<8x64xbf16>, vector<64x32xbf16>, vector<8x32xf32> -> vector<8x32xf32>
    %227 = arith.addf %226, %4 : vector<8x32xf32>
    %c0_102 = arith.constant 0 : index
    %c0_103 = arith.constant 0 : index
    %c0_104 = arith.constant 0 : index
    %228 = vector.load %arg13[%c0_102, %c0_103, %c0_104] : memref<1x8x32xf32, #tpu.memory_space<vmem>>, vector<1x8x32xf32>
    %229 = vector.shape_cast %228 : vector<1x8x32xf32> to vector<8x32xf32>
    %230 = vector.shape_cast %227 : vector<8x32xf32> to vector<1x8x32xf32>
    tpu.vector_store %arg13[%c0_102, %c0_103, %c0_104], %230 {strides = array<i32>} : memref<1x8x32xf32, #tpu.memory_space<vmem>>, vector<1x8x32xf32>,
    return
  }
  func.func @transform_0(%arg0: i32, %arg1: i32) -> (i32, i32, i32) {
    %c0_i32 = arith.constant 0 : i32
    %c0_i32_0 = arith.constant 0 : i32
    return %arg0, %arg1, %c0_i32 : i32, i32, i32
  }
  func.func @transform_1(%arg0: i32, %arg1: i32) -> (i32, i32) {
    %c0_i32 = arith.constant 0 : i32
    %c0_i32_0 = arith.constant 0 : i32
    %c0_i32_1 = arith.constant 0 : i32
    return %c0_i32, %c0_i32_0 : i32, i32
  }
  func.func @transform_2(%arg0: i32, %arg1: i32) -> (i32, i32) {
    %c0_i32 = arith.constant 0 : i32
    %c0_i32_0 = arith.constant 0 : i32
    %c0_i32_1 = arith.constant 0 : i32
    return %c0_i32, %c0_i32_0 : i32, i32
  }
  func.func @transform_3(%arg0: i32, %arg1: i32) -> (i32, i32) {
    %c0_i32 = arith.constant 0 : i32
    %c0_i32_0 = arith.constant 0 : i32
    %c0_i32_1 = arith.constant 0 : i32
    return %c0_i32, %c0_i32_0 : i32, i32
  }
  func.func @transform_4(%arg0: i32, %arg1: i32) -> (i32, i32) {
    %c0_i32 = arith.constant 0 : i32
    %c0_i32_0 = arith.constant 0 : i32
    %c0_i32_1 = arith.constant 0 : i32
    return %c0_i32, %c0_i32_0 : i32, i32
  }
  func.func @transform_5(%arg0: i32, %arg1: i32) -> (i32, i32) {
    %c0_i32 = arith.constant 0 : i32
    %c0_i32_0 = arith.constant 0 : i32
    %c0_i32_1 = arith.constant 0 : i32
    return %c0_i32, %c0_i32_0 : i32, i32
  }
  func.func @transform_6(%arg0: i32, %arg1: i32) -> (i32, i32) {
    %c0_i32 = arith.constant 0 : i32
    %c0_i32_0 = arith.constant 0 : i32
    %c0_i32_1 = arith.constant 0 : i32
    return %c0_i32, %c0_i32_0 : i32, i32
  }
  func.func @transform_7(%arg0: i32, %arg1: i32) -> (i32, i32) {
    %c0_i32 = arith.constant 0 : i32
    %c0_i32_0 = arith.constant 0 : i32
    %c0_i32_1 = arith.constant 0 : i32
    return %c0_i32, %c0_i32_0 : i32, i32
  }
  func.func @transform_8(%arg0: i32, %arg1: i32) -> (i32, i32) {
    %c0_i32 = arith.constant 0 : i32
    %c0_i32_0 = arith.constant 0 : i32
    %c0_i32_1 = arith.constant 0 : i32
    return %c0_i32, %c0_i32_0 : i32, i32
  }
  func.func @transform_9(%arg0: i32, %arg1: i32) -> (i32, i32) {
    %c0_i32 = arith.constant 0 : i32
    %c0_i32_0 = arith.constant 0 : i32
    %c0_i32_1 = arith.constant 0 : i32
    return %c0_i32, %c0_i32_0 : i32, i32
  }
  func.func @transform_10(%arg0: i32, %arg1: i32) -> (i32, i32) {
    %c0_i32 = arith.constant 0 : i32
    %c0_i32_0 = arith.constant 0 : i32
    %c0_i32_1 = arith.constant 0 : i32
    return %c0_i32, %c0_i32_0 : i32, i32
  }
  func.func @transform_11(%arg0: i32, %arg1: i32) -> (i32, i32, i32) {
    %c0_i32 = arith.constant 0 : i32
    %c0_i32_0 = arith.constant 0 : i32
    return %arg0, %arg1, %c0_i32 : i32, i32, i32
  }
}

</mosaic_0001>

<bundles_post_ra>
// kernel: tpu_custom_call.1
= control target key start
LH: loop header
LB: loop body
LE: loop exit
PB: predicated region body
PF: predicated region fallthrough
CT: control target
= control target key end

     0   :  { %s3265_s0 = inlined_call_operand.hbm [shape: f32[2,8,32], index: 0, kind: input, shape index: {}]   ;;  %s3266_s1 = inlined_call_operand.hbm [shape: bf16[32,64], index: 1, kind: input, shape index: {}]   ;;  %s3267_s2 = inlined_call_operand.hbm [shape: bf16[32,64], index: 2, kind: input, shape index: {}]   ;;  %s3268_s3 = inlined_call_operand.hbm [shape: f32[4,64], index: 3, kind: input, shape index: {}]   ;;  %s3269_s4 = inlined_call_operand.hbm [shape: f32[1,64], index: 4, kind: input, shape index: {}]   ;;  %s3270_s5 = inlined_call_operand.hbm [shape: bf16[64,256], index: 5, kind: input, shape index: {}]   ;;  %s3271_s6 = inlined_call_operand.hbm [shape: bf16[128,64], index: 6, kind: input, shape index: {}]   ;;  %s3272_s7 = inlined_call_operand.hbm [shape: f32[1,64], index: 7, kind: input, shape index: {}]   ;;  %s3273_s8 = inlined_call_operand.hbm [shape: f32[4,64], index: 8, kind: input, shape index: {}]   ;;  %s3274_s9 = inlined_call_operand.hbm [shape: f32[1,64], index: 9, kind: input, shape index: {}]   ;;  %s3275_s10 = inlined_call_operand.hbm [shape: bf16[64,32], index: 10, kind: input, shape index: {}]   ;;  %s3276_s11 = inlined_call_operand.hbm [shape: f32[2,8,32], index: 11, kind: output, shape index: {}]  }
   0x1   :  { %3291 = sst [smem:[#allocation35_spill]] %s3265_s0 }
   0x2   :  { %3292 = sst [smem:[#allocation36_spill]] %s3266_s1 }
   0x3   :  { %3293 = sst [smem:[#allocation37_spill]] %s3268_s3 }
   0x4   :  { %3294 = sst [smem:[#allocation38_spill]] %s3276_s11 }
   0x5   :  { %16 = vsyncpa [#allocation7], 0 }
   0x6   :  { %18 = vsyncpa [#allocation7 + $0x1], 0 }
   0x7   :  { %19 = vsyncpa [#allocation10], 0 }
   0x8   :  { %20 = vsyncpa [#allocation13], 0 }
   0x9   :  { %21 = vsyncpa [#allocation16], 0 }
   0xa   :  { %22 = vsyncpa [#allocation19], 0 }
   0xb   :  { %23 = vsyncpa [#allocation22], 0 }
   0xc   :  { %24 = vsyncpa [#allocation8], 0 }
   0xd   :  { %26 = vsyncpa [#allocation8 + $0x1], 0  ;;  %s2690_s17 = smov 0   ;;  %s2692_s18 = smov 0  }
   0xe   :  { %s2694_s19 = smov 0   ;;  %s2696_s20 = smov 0  }
   0xf   :  { %s2698_s21 = smov 0   ;;  %s2700_s22 = smov 0  }
  0x10 LB: > { %3295 = sst [smem:[#allocation32_spill]] %s2600_s20  ;;  %s3277_s23 = sadd.s32 4294967295, %s2608_s22   ;;  %s2608_s22 = sphi %s2700_s22, %s32_s22   ;;  %s2604_s21 = sphi %s2698_s21, %s3328_s21   ;;  %s2600_s20 = sphi %s2696_s20, %s3327_s20   ;;  %s2596_s19 = sphi %s2694_s19, %s3326_s19   ;;  %s2592_s18 = sphi %s2692_s18, %s3325_s18   ;;  %s2588_s17 = sphi %s2690_s17, %s3324_s17  }
  0x11   : > { %p1838_p0 = scmp.ge.s32.totalorder %s2608_s22, 1  ;;  %p2724_p1 = scmp.eq.s32.totalorder %s3277_s23, 0 }
  0x12   : > { %p315_p2 = scmp.lt.s32.totalorder %s2608_s22, 3  ;;  %s2610_s26 = smov [#allocation9]  }
  0x13   : > { %s3296_s24 = scalar_select %p2724_p1, 1, 0 }
  0x14   : > { %p2729_p3 = pnand %p1838_p0, %p315_p2  ;;  %s327_s27 = sshll.u32 %s2610_s26, 4  ;;  %s2733_s27 = int_to_ptr.vmem [resolvable:$true] %s327_s27 }
  0x15   : > { %3297 = sst [smem:[#allocation33_spill]] %s3296_s24  ;;  %s2611_s29 = smov [#allocation12]  }
  0x16   : > { %s3298_s25 = scalar_select %p2729_p3, 1, 0 }
  0x17   : > { %p2012_p4 = pneg %p2729_p3  ;;  %s354_s30 = sshll.u32 %s2611_s29, 4  ;;  %s2744_s30 = int_to_ptr.vmem [resolvable:$true] %s354_s30 }
  0x18   : > { %3299 = sst [smem:[#allocation34_spill]] %s3298_s25  ;;  %s2612_s12 = smov [#allocation15]  }
  0x19   : > { %p2740_p6 = pnand %p2012_p4, %p2724_p1  ;;  %s2746_s13 = sshll.u32 %s2612_s12, 4  ;;  %s376_s13 = int_to_ptr.vmem [resolvable:$true] %s2746_s13 }
  0x1a   : > { %s3301_s1 = sld [smem:[#allocation36_spill]] }
  0x1b   : > { %p2756_p8 = pneg %p2740_p6 }
  0x20   : > { %s2196_s16 = scalar_lea.hbm %s3301_s1, 256 }
  0x21   : > { %p2197_p7 = scmp.ne.s32.totalorder %s3301_s1, %s2196_s16  ;;  %p2203_p11 = scmp.lt.u32.totalorder %s2196_s16, %s3301_s1 }
  0x23   : > { %p2199_p9 = pnand %p2756_p8, %p2197_p7 }
  0x25   : > { %p2200_p10 = pneg %p2199_p9 }
  0x27   : > { %p2205_p12 = pnand %p2203_p11, %p2200_p10 }
  0x29   : > { %2208 = shalt.err (!%p2205_p12)
}
  0x2a   : > { %s2209_s23 = scalar_lea.vmem %s2733_s27, 256  ;;  %p2217_p4 = scmp.lt.s32.totalorder %s2733_s27, %s2733_s27 }
  0x2b   : > { %p2210_p13 = scmp.ne.s32.totalorder %s2733_s27, %s2209_s23  ;;  %p2218_p5 = scmp.lt.s32.totalorder %s2209_s23, %s2209_s23 }
  0x2d   : > { %p2212_p0 = pnand %p2210_p13, %p2756_p8  ;;  %p2219_p7 = por %p2218_p5, %p2217_p4 }
  0x2f   : > { %p2213_p2 = pneg %p2212_p0 }
  0x31   : > { %p2220_p9 = pnand %p2219_p7, %p2213_p2 }
  0x33   : > { %2223 = shalt.err (!%p2220_p9)
}
  0x34   : > { %s3286_s14 = smov 64   ;;  %s3288_s15 = smov 4  }
  0x35   : > { %2015 = dma.hbm_to_vmem [thread:$0]  (!%p2740_p6), %s3301_s1, 256, %s2733_s27, [#allocation10], %s3286_s14, %s3286_s14, %s3288_s15  }
  0x36   : > { %s3303_s3 = sld [smem:[#allocation37_spill]] }
  0x3c   : > { %s2224_s23 = scalar_lea.hbm %s3303_s3, 64 }
  0x3d   : > { %p2225_p5 = scmp.ne.s32.totalorder %s3303_s3, %s2224_s23  ;;  %p2231_p12 = scmp.lt.u32.totalorder %s2224_s23, %s3303_s3 }
  0x3f   : > { %p2227_p10 = pnand %p2225_p5, %p2756_p8 }
  0x41   : > { %p2228_p11 = pneg %p2227_p10 }
  0x43   : > { %p2233_p13 = pnand %p2231_p12, %p2228_p11 }
  0x45   : > { %2236 = shalt.err (!%p2233_p13)
}
  0x46   : > { %s2237_s27 = scalar_lea.vmem %s2744_s30, 64  ;;  %p2245_p7 = scmp.lt.s32.totalorder %s2744_s30, %s2744_s30 }
  0x47   : > { %p2238_p0 = scmp.ne.s32.totalorder %s2744_s30, %s2237_s27  ;;  %p2246_p9 = scmp.lt.s32.totalorder %s2237_s27, %s2237_s27 }
  0x49   : > { %p2240_p2 = pnand %p2238_p0, %p2756_p8  ;;  %p2247_p5 = por %p2246_p9, %p2245_p7 }
  0x4b   : > { %p2241_p4 = pneg %p2240_p2 }
  0x4d   : > { %p2248_p10 = pnand %p2247_p5, %p2241_p4 }
  0x4f   : > { %2251 = shalt.err (!%p2248_p10)
}
  0x50   : > { %2021 = dma.hbm_to_vmem [thread:$0]  (!%p2740_p6), %s3303_s3, 64, %s2744_s30, [#allocation13]  }
  0x51   : > { %s2252_s16 = scalar_lea.hbm %s3270_s5, 1024 }
  0x52   : > { %p2253_p11 = scmp.ne.s32.totalorder %s3270_s5, %s2252_s16  ;;  %p2259_p0 = scmp.lt.u32.totalorder %s2252_s16, %s3270_s5 }
  0x54   : > { %p2255_p12 = pnand %p2253_p11, %p2756_p8 }
  0x56   : > { %p2256_p13 = pneg %p2255_p12 }
  0x58   : > { %p2261_p2 = pnand %p2259_p0, %p2256_p13 }
  0x5a   : > { %2264 = shalt.err (!%p2261_p2)
}
  0x5b   : > { %s2265_s27 = scalar_lea.vmem %s376_s13, 1024  ;;  %p2273_p5 = scmp.lt.s32.totalorder %s376_s13, %s376_s13 }
  0x5c   : > { %p2266_p4 = scmp.ne.s32.totalorder %s376_s13, %s2265_s27  ;;  %p2274_p10 = scmp.lt.s32.totalorder %s2265_s27, %s2265_s27 }
  0x5e   : > { %p2268_p7 = pnand %p2266_p4, %p2756_p8  ;;  %p2275_p3 = por %p2274_p10, %p2273_p5 }
  0x60   : > { %p2269_p9 = pneg %p2268_p7 }
  0x62   : > { %p2276_p1 = pnand %p2275_p3, %p2269_p9 }
  0x64   : > { %2279 = shalt.err (!%p2276_p1)
}
  0x65   : > { %s2615_s30 = smov 128   ;;  %s2616_s0 = smov 8  }
  0x66   : > { %2027 = dma.hbm_to_vmem [thread:$0]  (!%p2740_p6), %s3270_s5, 1024, %s376_s13, [#allocation16], %s2615_s30, %s2615_s30, %s2616_s0  }
  0x67   : > { %s2617_s25 = smov [#allocation18]   ;;  %s2618_s26 = smov [#allocation21]  }
  0x68   : > { %s402_s16 = sshll.u32 %s2617_s25, 4  ;;  %s424_s29 = sshll.u32 %s2618_s26, 4  ;;  %s403_s16 = int_to_ptr.vmem [resolvable:$true] %s402_s16  ;;  %s425_s29 = int_to_ptr.vmem [resolvable:$true] %s424_s29 }
  0x69   : > { %s2280_s27 = scalar_lea.hbm %s3272_s7, 16 }
  0x6a   : > { %p2281_p1 = scmp.ne.s32.totalorder %s3272_s7, %s2280_s27  ;;  %p2287_p12 = scmp.lt.u32.totalorder %s2280_s27, %s3272_s7 }
  0x6c   : > { %p2283_p3 = pnand %p2281_p1, %p2756_p8 }
  0x6e   : > { %p2284_p11 = pneg %p2283_p3 }
  0x70   : > { %p2289_p13 = pnand %p2287_p12, %p2284_p11 }
  0x72   : > { %2292 = shalt.err (!%p2289_p13)
}
  0x73   : > { %s2293_s13 = scalar_lea.vmem %s403_s16, 16  ;;  %s2300_s30 = scalar_lea.vmem %s403_s16, 32 }
  0x74   : > { %p2294_p0 = scmp.ne.s32.totalorder %s403_s16, %s2293_s13  ;;  %p2301_p7 = scmp.lt.s32.totalorder %s403_s16, %s403_s16 }
  0x75   : > { %p2302_p9 = scmp.lt.s32.totalorder %s2300_s30, %s2293_s13 }
  0x76   : > { %p2296_p2 = pnand %p2294_p0, %p2756_p8 }
  0x77   : > { %p2303_p5 = por %p2302_p9, %p2301_p7 }
  0x78   : > { %p2297_p4 = pneg %p2296_p2 }
  0x7a   : > { %p2304_p10 = pnand %p2303_p5, %p2297_p4 }
  0x7c   : > { %2307 = shalt.err (!%p2304_p10)
}
  0x7d   : > { %2033 = dma.hbm_to_vmem [thread:$0]  (!%p2740_p6), %s3272_s7, 16, %s403_s16, [#allocation19]  }
  0x7e   : > { %s2308_s0 = scalar_lea.hbm %s3274_s9, 16 }
  0x7f   : > { %p2309_p1 = scmp.ne.s32.totalorder %s3274_s9, %s2308_s0  ;;  %p2315_p12 = scmp.lt.u32.totalorder %s2308_s0, %s3274_s9 }
  0x81   : > { %p2311_p3 = pnand %p2309_p1, %p2756_p8 }
  0x83   : > { %p2312_p11 = pneg %p2311_p3 }
  0x85   : > { %p2317_p13 = pnand %p2315_p12, %p2312_p11 }
  0x87   : > { %2320 = shalt.err (!%p2317_p13)
}
  0x88   : > { %s2321_s12 = scalar_lea.vmem %s425_s29, 16  ;;  %s2328_s16 = scalar_lea.vmem %s425_s29, 32 }
  0x89   : > { %p2322_p0 = scmp.ne.s32.totalorder %s425_s29, %s2321_s12  ;;  %p2329_p7 = scmp.lt.s32.totalorder %s425_s29, %s425_s29 }
  0x8a   : > { %p2330_p9 = scmp.lt.s32.totalorder %s2328_s16, %s2321_s12 }
  0x8b   : > { %p2324_p2 = pnand %p2322_p0, %p2756_p8 }
  0x8c   : > { %p2331_p5 = por %p2330_p9, %p2329_p7 }
  0x8d   : > { %p2325_p4 = pneg %p2324_p2 }
  0x8f   : > { %p2332_p10 = pnand %p2331_p5, %p2325_p4 }
  0x91   : > { %2335 = shalt.err (!%p2332_p10)
}
  0x92   : > { %2039 = dma.hbm_to_vmem [thread:$0]  (!%p2740_p6), %s3274_s9, 16, %s425_s29, [#allocation22]  }
  0x93   : > { %s2619_s13 = smov [#allocation11]   ;;  %s2620_s14 = smov [#allocation14]  }
  0x94   : > { %s340_s30 = sshll.u32 %s2619_s13, 4  ;;  %s365_s15 = sshll.u32 %s2620_s14, 4  ;;  %s341_s30 = int_to_ptr.vmem [resolvable:$true] %s340_s30  ;;  %s366_s15 = int_to_ptr.vmem [resolvable:$true] %s365_s15 }
  0x95   : > { %s2336_s0 = scalar_lea.hbm %s3267_s2, 256 }
  0x96   : > { %p2337_p1 = scmp.ne.s32.totalorder %s3267_s2, %s2336_s0  ;;  %p2343_p12 = scmp.lt.u32.totalorder %s2336_s0, %s3267_s2 }
  0x98   : > { %p2339_p3 = pnand %p2337_p1, %p2756_p8 }
  0x9a   : > { %p2340_p11 = pneg %p2339_p3 }
  0x9c   : > { %p2345_p13 = pnand %p2343_p12, %p2340_p11 }
  0x9e   : > { %2348 = shalt.err (!%p2345_p13)
}
  0x9f   : > { %s2349_s29 = scalar_lea.vmem %s341_s30, 256  ;;  %p2357_p7 = scmp.lt.s32.totalorder %s341_s30, %s341_s30 }
  0xa0   : > { %p2350_p0 = scmp.ne.s32.totalorder %s341_s30, %s2349_s29  ;;  %p2358_p9 = scmp.lt.s32.totalorder %s2349_s29, %s2349_s29 }
  0xa2   : > { %p2352_p2 = pnand %p2350_p0, %p2756_p8  ;;  %p2359_p5 = por %p2358_p9, %p2357_p7 }
  0xa4   : > { %p2353_p4 = pneg %p2352_p2 }
  0xa6   : > { %p2360_p10 = pnand %p2359_p5, %p2353_p4 }
  0xa8   : > { %2363 = shalt.err (!%p2360_p10)
}
  0xa9   : > { %s3304_s12 = smov 4   ;;  %s3305_s16 = smov 64  }
  0xaa   : > { %2018 = dma.hbm_to_vmem [thread:$0]  (!%p2740_p6), %s3267_s2, 256, %s341_s30, [#allocation10], %s3305_s16, %s3305_s16, %s3304_s12  }
  0xab   : > { %s2364_s1 = scalar_lea.hbm %s3269_s4, 16 }
  0xac   : > { %p2365_p1 = scmp.ne.s32.totalorder %s3269_s4, %s2364_s1  ;;  %p2371_p12 = scmp.lt.u32.totalorder %s2364_s1, %s3269_s4 }
  0xae   : > { %p2367_p3 = pnand %p2365_p1, %p2756_p8 }
  0xb0   : > { %p2368_p11 = pneg %p2367_p3 }
  0xb2   : > { %p2373_p13 = pnand %p2371_p12, %p2368_p11 }
  0xb4   : > { %2376 = shalt.err (!%p2373_p13)
}
  0xb5   : > { %s2377_s25 = scalar_lea.vmem %s366_s15, 16  ;;  %s2384_s30 = scalar_lea.vmem %s366_s15, 32 }
  0xb6   : > { %p2378_p0 = scmp.ne.s32.totalorder %s366_s15, %s2377_s25  ;;  %p2385_p7 = scmp.lt.s32.totalorder %s366_s15, %s366_s15 }
  0xb7   : > { %p2386_p9 = scmp.lt.s32.totalorder %s2384_s30, %s2377_s25 }
  0xb8   : > { %p2380_p2 = pnand %p2378_p0, %p2756_p8 }
  0xb9   : > { %p2387_p5 = por %p2386_p9, %p2385_p7 }
  0xba   : > { %p2381_p4 = pneg %p2380_p2 }
  0xbc   : > { %p2388_p10 = pnand %p2387_p5, %p2381_p4 }
  0xbe   : > { %2391 = shalt.err (!%p2388_p10)
}
  0xbf   : > { %2024 = dma.hbm_to_vmem [thread:$0]  (!%p2740_p6), %s3269_s4, 16, %s366_s15, [#allocation13]  }
  0xc0   : > { %s2621_s23 = smov [#allocation17]   ;;  %s2622_s13 = smov [#allocation20]  }
  0xc1   : > { %s388_s27 = sshll.u32 %s2621_s23, 4  ;;  %s413_s14 = sshll.u32 %s2622_s13, 4  ;;  %s389_s27 = int_to_ptr.vmem [resolvable:$true] %s388_s27  ;;  %s414_s14 = int_to_ptr.vmem [resolvable:$true] %s413_s14 }
  0xc2   : > { %s2392_s0 = scalar_lea.hbm %s3271_s6, 1024 }
  0xc3   : > { %p2393_p1 = scmp.ne.s32.totalorder %s3271_s6, %s2392_s0  ;;  %p2399_p12 = scmp.lt.u32.totalorder %s2392_s0, %s3271_s6 }
  0xc5   : > { %p2395_p3 = pnand %p2393_p1, %p2756_p8 }
  0xc7   : > { %p2396_p11 = pneg %p2395_p3 }
  0xc9   : > { %p2401_p13 = pnand %p2399_p12, %p2396_p11 }
  0xcb   : > { %2404 = shalt.err (!%p2401_p13)
}
  0xcc   : > { %s2405_s15 = scalar_lea.vmem %s389_s27, 1024  ;;  %p2413_p7 = scmp.lt.s32.totalorder %s389_s27, %s389_s27 }
  0xcd   : > { %p2406_p0 = scmp.ne.s32.totalorder %s389_s27, %s2405_s15  ;;  %p2414_p9 = scmp.lt.s32.totalorder %s2405_s15, %s2405_s15 }
  0xcf   : > { %p2408_p2 = pnand %p2406_p0, %p2756_p8  ;;  %p2415_p5 = por %p2414_p9, %p2413_p7 }
  0xd1   : > { %p2409_p4 = pneg %p2408_p2 }
  0xd3   : > { %p2416_p10 = pnand %p2415_p5, %p2409_p4 }
  0xd5   : > { %2419 = shalt.err (!%p2416_p10)
}
  0xd6   : > { %2030 = dma.hbm_to_vmem [thread:$0]  (!%p2740_p6), %s3271_s6, 1024, %s389_s27, [#allocation16], %s3305_s16, %s3305_s16, %s3304_s12  }
  0xd7   : > { %s2420_s1 = scalar_lea.hbm %s3273_s8, 64 }
  0xd8   : > { %p2421_p1 = scmp.ne.s32.totalorder %s3273_s8, %s2420_s1  ;;  %p2427_p12 = scmp.lt.u32.totalorder %s2420_s1, %s3273_s8 }
  0xda   : > { %p2423_p3 = pnand %p2421_p1, %p2756_p8 }
  0xdc   : > { %p2424_p11 = pneg %p2423_p3 }
  0xde   : > { %p2429_p13 = pnand %p2427_p12, %p2424_p11 }
  0xe0   : > { %2432 = shalt.err (!%p2429_p13)
}
  0xe1   : > { %s2433_s25 = scalar_lea.vmem %s414_s14, 64  ;;  %p2441_p7 = scmp.lt.s32.totalorder %s414_s14, %s414_s14 }
  0xe2   : > { %p2434_p0 = scmp.ne.s32.totalorder %s414_s14, %s2433_s25  ;;  %p2442_p9 = scmp.lt.s32.totalorder %s2433_s25, %s2433_s25 }
  0xe4   : > { %p2436_p2 = pnand %p2434_p0, %p2756_p8  ;;  %p2443_p5 = por %p2442_p9, %p2441_p7 }
  0xe6   : > { %p2437_p4 = pneg %p2436_p2 }
  0xe8   : > { %p2444_p10 = pnand %p2443_p5, %p2437_p4 }
  0xea   : > { %2447 = shalt.err (!%p2444_p10)
}
  0xeb   : > { %2036 = dma.hbm_to_vmem [thread:$0]  (!%p2740_p6), %s3273_s8, 64, %s414_s14, [#allocation19]  }
  0xec   : > { %s2623_s15 = smov [#allocation23]   ;;  %s2448_s13 = scalar_lea.hbm %s3275_s10, 512 }
  0xed   : > { %s434_s26 = sshll.u32 %s2623_s15, 4  ;;  %p2449_p1 = scmp.ne.s32.totalorder %s3275_s10, %s2448_s13  ;;  %s435_s26 = int_to_ptr.vmem [resolvable:$true] %s434_s26 }
  0xee   : > { %p2455_p12 = scmp.lt.u32.totalorder %s2448_s13, %s3275_s10 }
  0xef   : > { %p2451_p3 = pnand %p2449_p1, %p2756_p8 }
  0xf1   : > { %p2452_p11 = pneg %p2451_p3 }
  0xf3   : > { %p2457_p13 = pnand %p2455_p12, %p2452_p11 }
  0xf5   : > { %2460 = shalt.err (!%p2457_p13)
}
  0xf6   : > { %s2461_s14 = scalar_lea.vmem %s435_s26, 512  ;;  %p2469_p7 = scmp.lt.s32.totalorder %s435_s26, %s435_s26 }
  0xf7   : > { %p2462_p0 = scmp.ne.s32.totalorder %s435_s26, %s2461_s14  ;;  %p2470_p9 = scmp.lt.s32.totalorder %s2461_s14, %s2461_s14 }
  0xf9   : > { %p2464_p2 = pnand %p2462_p0, %p2756_p8  ;;  %p2471_p5 = por %p2470_p9, %p2469_p7 }
  0xfb   : > { %p2465_p4 = pneg %p2464_p2 }
  0xfd   : > { %p2472_p10 = pnand %p2471_p5, %p2465_p4 }
  0xff   : > { %2475 = shalt.err (!%p2472_p10)
}
 0x100   : > { %s3306_s11 = sld [smem:[#allocation33_spill]]  ;;  %s1837_s28 = sadd.s32 4294967294, %s2608_s22  }
 0x101   : > { %2042 = dma.hbm_to_vmem [thread:$0]  (!%p2740_p6), %s3275_s10, 512, %s435_s26, [#allocation22], %s3305_s16, %s3305_s16, %s3304_s12  }
 0x102   : > { %s44_s27 = sadd.s32 1, %s2604_s21  ;;  %s53_s30 = sadd.s32 1, %s2596_s19 }
 0x103   : > { %p46_p8 = scmp.ge.s32.totalorder %s44_s27, 2  ;;  %p60_p1 = scmp.ne.s32.totalorder %s2596_s19, %s2592_s18 }
 0x104   : > { %p61_p3 = scmp.eq.s32.totalorder %s2608_s22, 0  ;;  %p66_p12 = scmp.ne.s32.totalorder %s2592_s18, %s2588_s17 }
 0x105   : > { %s3330_s27 = smov (%p46_p8, %s44_s27), 0  ;;  %s3308_s16 = sadd.s32 4294967295, %s2608_s22  }
 0x106   : > { %p2965_p11 = por %p61_p3, %p60_p1  ;;  %s48_s12 = ssub.s32 %s2604_s21, %s3330_s27 }
 0x107   : > { %p302_p6 = scmp.eq.s32.totalorder %s3308_s16, 1  ;;  %p51_p13 = scmp.eq.s32.totalorder %s48_s12, 0 }
 0x108   : > { %p3309_p0 = scmp.ne.s32.totalorder %s3306_s11, 0  ;;  %p308_p7 = scmp.eq.s32.totalorder %s1837_s28, 1 }
 0x109   : > { %p2981_p4 = por %p302_p6, %p60_p1  ;;  %p2061_p5 = scmp.lt.s32.totalorder %s2608_s22, 2 }
 0x10a   : > { %p2977_p2 = por %p3309_p0, %p66_p12  ;;  %p2988_p9 = por %p308_p7, %p66_p12 }
 0x10b   : > { %s3311_s29 = scalar_select %p2981_p4, 1, 0 }
 0x10c   : > { %s2986_s23 = scalar_select %p51_p13, %s2596_s19, %s53_s30  }
 0x10d   : > { %s3312_s13 = scalar_select %p2988_p9, 1, 0 }
 0x10e   : > { %s448_s1 = sand.u32 1, %s2596_s19   ;;  %s1851_s3 = sshll.u32 %s2604_s21, 7 }
 0x10f   : > { %s1850_s0 = sshll.u32 %s448_s1, 3  ;;  %s3313_s24 = sld [smem:[#allocation35_spill]] }
 0x110   : > { %s452_s11 = scalar_lea.vmem [#allocation6], %s1850_s0  ;;  %p3002_p10 = pnand %p2061_p5, %p2965_p11 }
 0x111   : > { %s460_s28 = sshll.u32 %s452_s11, 4  ;;  %s449_s12 = scalar_lea.sflag [#allocation7], %s448_s1  ;;  %s3006_s28 = int_to_ptr.vmem [resolvable:$true] %s460_s28 }
 0x112   : > { %p2478_p1 = pneg %p3002_p10 }
 0x115   : > { %s2998_s25 = scalar_lea.hbm %s3313_s24, %s1851_s3  ;;  %s2481_s15 = scalar_lea.hbm %s3313_s24, 256 }
 0x116   : > { %s2476_s16 = scalar_lea.hbm %s2998_s25, 128  ;;  %p2482_p11 = scmp.lt.u32.totalorder %s2998_s25, %s3313_s24 }
 0x117   : > { %p2477_p8 = scmp.ne.s32.totalorder %s2998_s25, %s2476_s16  ;;  %p2483_p6 = scmp.lt.u32.totalorder %s2481_s15, %s2476_s16 }
 0x118   : > { %p2485_p0 = scmp.lt.u32.totalorder %s2476_s16, %s2998_s25 }
 0x119   : > { %p2479_p3 = pnand %p2478_p1, %p2477_p8  ;;  %p2484_p13 = por %p2483_p6, %p2482_p11 }
 0x11b   : > { %p2480_p12 = pneg %p2479_p3  ;;  %p2486_p7 = por %p2485_p0, %p2484_p13 }
 0x11d   : > { %p2487_p5 = pnand %p2486_p7, %p2480_p12 }
 0x11f   : > { %2490 = shalt.err (!%p2487_p5)
}
 0x120   : > { %s2491_s1 = scalar_lea.vmem %s3006_s28, 128  ;;  %s2624_s11 = smov [#allocation6]  }
 0x121   : > { %p2492_p8 = scmp.ne.s32.totalorder %s3006_s28, %s2491_s1  ;;  %s2496_s3 = sshll.u32 %s2624_s11, 4  ;;  %s2497_s3 = int_to_ptr.vmem [resolvable:$false] %s2496_s3 }
 0x122   : > { %s2498_s0 = scalar_lea.vmem %s2497_s3, 256  ;;  %p2499_p4 = scmp.lt.s32.totalorder %s3006_s28, %s2497_s3 }
 0x123   : > { %p2494_p3 = pnand %p2492_p8, %p2478_p1  ;;  %p2500_p11 = scmp.lt.s32.totalorder %s2498_s0, %s2491_s1 }
 0x125   : > { %p2495_p9 = pneg %p2494_p3  ;;  %p2501_p6 = por %p2500_p11, %p2499_p4 }
 0x127   : > { %p2502_p13 = pnand %p2501_p6, %p2495_p9 }
 0x129   : > { %2505 = shalt.err (!%p2502_p13)
}
 0x12a   : > { %2046 = dma.hbm_to_vmem [thread:$0]  (!%p3002_p10), %s2998_s25, 128, %s3006_s28, %s449_s12  }
 0x12b   : > { %s3315_s16 = sld [smem:[#allocation34_spill]] }
 0x131   : > { %p3316_p12 = scmp.ne.s32.totalorder %s3315_s16, 0 }
 0x132   : > { %s3036_s15 = sand.u32 (!%p3316_p12), 1, %s2592_s18  }
 0x133   : > { %469 = sbr.rel (%p3316_p12) target bundleno = 1394 (0x572), region = 64  ;;  %s1853_s20 = sshll.u32 (!%p3316_p12), %s3036_s15, 3 }
 0x134   : > { %s472_s14 = scalar_lea.sflag (!%p3316_p12), [#allocation7], %s3036_s15  ;;  %s3042_s1 = scalar_lea.vmem (!%p3316_p12), [#allocation6], %s1853_s20 }
 0x13a   : > { %2559 = dma.done.wait (%p2977_p2), %s472_s14, 128  }
 0x13b   : > { %2561 = vsyncadd (%p2977_p2), %s472_s14, 4294967168  ;;  %s3317_s25 = sld [smem:[#allocation33_spill]] }
 0x141   : > { %p3318_p4 = scmp.ne.s32.totalorder %s3317_s25, 0 }
 0x143   : > { %2563 = dma.done.wait (%p3318_p4), [#allocation10], 512  }
 0x144   : > { %2565 = vsyncadd (%p3318_p4), [#allocation10], 4294966784 }
 0x145   : > { %2567 = dma.done.wait (%p3318_p4), [#allocation13], 80  }
 0x146   : > { %2569 = vsyncadd (%p3318_p4), [#allocation13], 4294967216 }
 0x147   : > { %2571 = dma.done.wait (%p3318_p4), [#allocation16], 2048  }
 0x148   : > { %2573 = vsyncadd (%p3318_p4), [#allocation16], 4294965248 }
 0x149   : > { %2575 = dma.done.wait (%p3318_p4), [#allocation19], 80  }
 0x14a   : > { %2577 = vsyncadd (%p3318_p4), [#allocation19], 4294967216 }
 0x14b   : > { %2579 = dma.done.wait (%p3318_p4), [#allocation22], 528  }
 0x14c   : > { %2581 = vsyncadd (%p3318_p4), [#allocation22], 4294966768  ;;  %vm561_vm0 = vcmask 518144   ;;  %v2625_v0 = vmov 0.0   ;;  %vm2626_vm1 = vmmov 0   ;;  %v2139_v1 = vld [vmem:[#allocation9] sm:$0xff]   ;;  %v696_v23 = vlaneseq }
 0x14d   : > { %1920 = vmatprep.subr.bf16.mxu0 %v2625_v0  ;;  %1924 = vmatprep.mubr.msk.bf16.mxu0 %vm2626_vm1, %v2625_v0  ;;  %562 = vst.msk [vmem:[#allocation3] sm:$0x7] %vm561_vm0, %v2625_v0  ;;  %v2140_v2 = vld [vmem:[#allocation9 + $0x8] sm:$0xff]   ;;  %v563_v3 = vld [vmem:[%s3042_s1] sm:$0xff]  ;;  %vm581_vm2 = vcmask 261120   ;;  %v2627_v10 = vmov 0  }
 0x14e   : > { %1928 = vmatprep.subr.bf16.mxu1 %v2625_v0  ;;  %1932 = vmatprep.mubr.msk.bf16.mxu1 %vm2626_vm1, %v2625_v0  ;;  %v564_v4 = vpack.c.bf16 %v563_v3, %v563_v3  ;;  %v2143_v5 = vld [vmem:[#allocation15 + $0x4] ss:$8 sps:$4 sm:$0xff]   ;;  %v2141_v6 = vld [vmem:[#allocation15] ss:$8 sps:$4 sm:$0xff]   ;;  %v2144_v7 = vld [vmem:[#allocation15 + $0x10] ss:$8 sps:$4 sm:$0xff]  }
 0x14f   : > { %1921 = vmatpush3.bf16.msra.mxu0 %v2139_v1  ;;  %v2146_v8 = vld [vmem:[#allocation15 + $0x14] ss:$8 sps:$4 sm:$0xff]   ;;  %v2149_v9 = vld [vmem:[#allocation15 + $0x24] ss:$8 sps:$4 sm:$0xff]   ;;  %v2147_v11 = vld [vmem:[#allocation15 + $0x20] ss:$8 sps:$4 sm:$0xff]  }
 0x150   : > { %1922 = vmatprep.subr.bf16.mxu0 %v2625_v0  ;;  %v2152_v12 = vld [vmem:[#allocation15 + $0x34] ss:$8 sps:$4 sm:$0xff]   ;;  %v2150_v13 = vld [vmem:[#allocation15 + $0x30] ss:$8 sps:$4 sm:$0xff]   ;;  %v2155_v16 = vld [vmem:[#allocation17] sm:$0xff]   ;;  %v3091_v24 = vshrl.u32 %v696_v23, 7 }
 0x151   : > { %v2153_v14 = vld [vmem:[#allocation11] sm:$0xff]   ;;  %v2154_v15 = vld [vmem:[#allocation11 + $0x8] sm:$0xff]   ;;  %v2159_v20 = vld [vmem:[#allocation17 + $0x20] sm:$0xff]   ;;  %vm750_vm3 = vcmask 523269   ;;  %vm685_vm4 = vcmask 1042432   ;;  %vm710_vm5 = vcmask 1046528  }
 0x152   : > { %1929 = vmatpush3.bf16.msra.mxu1 %v2153_v14  ;;  %v2156_v17 = vld [vmem:[#allocation17 + $0x8] sm:$0xff]   ;;  %v2157_v18 = vld [vmem:[#allocation17 + $0x10] sm:$0xff]   ;;  %v2158_v19 = vld [vmem:[#allocation17 + $0x18] sm:$0xff]   ;;  %v704_v25 = vsub.s32 1, %v3091_v24  ;;  %v718_v26 = vsub.s32 2, %v3091_v24  ;;  %v732_v27 = vsub.s32 3, %v3091_v24 }
 0x153   : > { %1923 = vmatpush3.bf16.msra.mxu0 %v2140_v2  ;;  %1930 = vmatprep.subr.bf16.mxu1 %v2625_v0  ;;  %v2160_v21 = vld [vmem:[#allocation17 + $0x28] sm:$0xff]   ;;  %v2161_v22 = vld [vmem:[#allocation17 + $0x30] sm:$0xff]   ;;  %v687_v28 = vld [vmem:[#allocation12] sm:$0xf]  ;;  %v3097_v29 = vsub.s32 0, %v3091_v24  ;;  %vm724_vm6 = vcmask 1045504  }
 0x154   : > { %805 = vmatprep.subr.bf16.mxu0 %v2143_v5  ;;  %v681_v30 = vld [vmem:[#allocation3] sm:$0x7]  ;;  %v705_v31 = vrot.slane %v687_v28, %v704_v25  ;;  %v719_v32 = vrot.slane %v687_v28, %v718_v26  ;;  %v733_v33 = vrot.slane %v687_v28, %v732_v27  ;;  %v1871_v40 = vld [vmem:[#allocation14] ss:$0 sm:$0xff]  ;;  %vm738_vm7 = vcmask 1044480   ;;  %s3319_s26 = sld [smem:[#allocation32_spill]] }
 0x155   : > { %v699_v35 = vrot.slane %v687_v28, %v3097_v29  ;;  %vm801_vm8 = vcmask 523264   ;;  %vm559_vm9 = vcmask 519168   ;;  %vm1089_vm11 = vcmask 517120   ;;  %s553_s30 = scalar_lea.vmem [#allocation24], %s1853_s20  ;;  %s3320_s0 = sld [smem:[#allocation38_spill]] }
 0x156   : > { %1925 = vmatmul.mubr.msk.bf16.vlgmr.msra.gmra.mrb[0].mxu0 %vm581_vm2, %v564_v4  ;;  %1931 = vmatpush3.bf16.msra.mxu1 %v2154_v15  ;;  %560 = vst.msk [vmem:[#allocation2] sm:$0xf] %vm559_vm9, %v2625_v0  ;;  %vm1557_vm12 = vcmask 1041409   ;;  %vm1560_vm13 = vcmask 1042434   ;;  %vm1563_vm14 = vcmask 1043459   ;;  %vm1566_vm15 = vcmask 1044484  }
 0x157   : > { %806 = vmatpush1.bf16.msra.mxu0 %v2141_v6  ;;  %837 = vmatprep.mubr.bf16.mxu0 %v2627_v10  ;;  %v2162_v6 = vld [vmem:[#allocation17 + $0x38] sm:$0xff]   ;;  %vm1569_vm0 = vcmask 1045509   ;;  %s1661_s12 = sshll.u32 %s553_s30, 4  ;;  %s1647_s20 = scalar_lea.sflag [#allocation8], %s3036_s15  ;;  %s3217_s12 = int_to_ptr.vmem [resolvable:$true] %s1661_s12 }
 0x158   : > { %807 = vmatprep.subr.bf16.mxu0 %v2146_v8  ;;  %1936 = vmatprep.subr.bf16.mxu1 %v2625_v0  ;;  %s2506_s14 = scalar_lea.vmem %s3217_s12, 128  ;;  %p3321_p9 = scmp.ne.s32.totalorder %s3311_s29, 0 }
 0x159   : > { %1933 = vmatmul.mubr.msk.bf16.vlgmr.msra.gmra.mrb[0].mxu1 %vm581_vm2, %v564_v4  ;;  %p2507_p2 = scmp.ne.s32.totalorder %s3217_s12, %s2506_s14 }
 0x15a   : > { %1937 = vmatpush3.bf16.msra.mxu1 %v2155_v16  ;;  %1952 = vmatprep.mubr.msk.bf16.mxu1 %vm2626_vm1, %v2625_v0  ;;  %v1186_v16 = vsub.s32 5, %v3091_v24  ;;  %s1897_s28 = sshll.u32 %s3319_s26, 7 }
 0x15b   : > { %808 = vmatpush1.bf16.msra.mxu0 %v2144_v7  ;;  %1938 = vmatprep.subr.bf16.mxu1 %v2625_v0  ;;  %s3215_s16 = scalar_lea.hbm %s3320_s0, %s1897_s28  ;;  %p2508_p10 = pnand %p2507_p2, %p3321_p9 }
 0x15c   : > { %809 = vmatprep.subr.bf16.mxu0 %v2149_v9 }
 0x15d   : > { %p2509_p1 = pneg %p2508_p10 }
 0x15e   : > { %1939 = vmatpush3.bf16.msra.mxu1 %v2156_v17  ;;  %v1179_v17 = vsub.s32 4, %v3091_v24 }
 0x15f   : > { %810 = vmatpush1.bf16.msra.mxu0 %v2147_v11  ;;  %1940 = vmatprep.subr.bf16.mxu1 %v2625_v0 }
 0x160   : > { %811 = vmatprep.subr.bf16.mxu0 %v2152_v12 }
 0x162   : > { %1941 = vmatpush3.bf16.msra.mxu1 %v2157_v18 }
 0x163   : > { %812 = vmatpush1.bf16.msra.mxu0 %v2150_v13  ;;  %1942 = vmatprep.subr.bf16.mxu1 %v2625_v0 }
 0x164   : > { %1956 = vmatprep.subr.bf16.mxu0 %v2625_v0 }
 0x166   : > { %1943 = vmatpush3.bf16.msra.mxu1 %v2158_v19 }
 0x167   : > { %1944 = vmatprep.subr.bf16.mxu1 %v2625_v0 }
 0x16a   : > { %1945 = vmatpush3.bf16.msra.mxu1 %v2159_v20  ;;  %v1200_v20 = vsub.s32 7, %v3091_v24 }
 0x16b   : > { %1946 = vmatprep.subr.bf16.mxu1 %v2625_v0 }
 0x16e   : > { %1947 = vmatpush3.bf16.msra.mxu1 %v2160_v21  ;;  %v1193_v21 = vsub.s32 6, %v3091_v24 }
 0x16f   : > { %1948 = vmatprep.subr.bf16.mxu1 %v2625_v0 }
 0x172   : > { %1949 = vmatpush3.bf16.msra.mxu1 %v2161_v22 }
 0x173   : > { %1950 = vmatprep.subr.bf16.mxu1 %v2625_v0 }
 0x176   : > { %1951 = vmatpush3.bf16.msra.mxu1 %v2162_v6 }
 0x229   : > { %v619_v34 = vpop.f32.mrb[0].mxu0 }
 0x22a   : > { %v683_v36 = vrot.slane %v619_v34, 5  ;;  %751 = vst.msk [vmem:[#allocation3 - $0x5] sm:$0xe0] %vm750_vm3, %v619_v34  ;;  %v1926_v37 = vpop.f32.mrb[1].mxu0  ;;  %v1881_v34 = vld [vmem:[#allocation18] ss:$0 sm:$0xff] }
 0x22b   : > { %v622_v38 = vpop.f32.mrb[2].mxu0  ;;  %vm1575_vm3 = vcmask 1047559  }
 0x22c   : > { %v686_v39 = vsel %vm685_vm4, %v681_v30, %v683_v36  ;;  %v707_v41 = vmul.f32 %v705_v31, %v683_v36  ;;  %v721_v42 = vmul.f32 %v719_v32, %v683_v36  ;;  %v735_v43 = vmul.f32 %v733_v33, %v683_v36  ;;  %v1927_v44 = vpop.f32.mrb[3].mxu0  ;;  %v2163_v30 = vld [vmem:[#allocation23] sm:$0xff]  }
 0x22d   : > { %v700_v45 = vmul.f32 %v699_v35, %v686_v39  ;;  %v706_v46 = vmul.f32 %v705_v31, %v686_v39  ;;  %v720_v47 = vmul.f32 %v719_v32, %v686_v39  ;;  %v734_v48 = vmul.f32 %v733_v33, %v686_v39  ;;  %v2164_v31 = vld [vmem:[#allocation23 + $0x8] sm:$0xff]   ;;  %v2165_v32 = vld [vmem:[#allocation23 + $0x10] sm:$0xff]   ;;  %v2166_v33 = vld [vmem:[#allocation23 + $0x18] sm:$0xff]  }
 0x22e   : > { %v712_v49 = vrot.slane %v707_v41, 1  ;;  %v726_v53 = vrot.slane %v721_v42, 2  ;;  %v740_v56 = vrot.slane %v735_v43, 3  ;;  %v2628_v44 = vmov 1966171168  }
 0x22f   : > { %v701_v50 = vadd.f32 %v1871_v40, %v700_v45  ;;  %v711_v51 = vrot.slane %v706_v46, 1  ;;  %v725_v52 = vrot.slane %v720_v47, 2  ;;  %v739_v55 = vrot.slane %v734_v48, 3 }
 0x230   : > { %v970_v45 = vunpack.c.l.s4 %v2628_v44 }
 0x231   : > { %v713_v54 = vsel %vm710_vm5, %v711_v51, %v712_v49  ;;  %v727_v58 = vsel %vm724_vm6, %v725_v52, %v726_v53  ;;  %v741_v60 = vsel %vm738_vm7, %v739_v55, %v740_v56 }
 0x232   : > { %v715_v57 = vadd.f32 %v713_v54, %v701_v50  ;;  %v971_v46 = vunpack.c.0.s8 %v970_v45 }
 0x234   : > { %v729_v59 = vadd.f32 %v727_v58, %v715_v57  ;;  %v974_v48 = vsub.s32 %v971_v46, %v3091_v24 }
 0x236   : > { %v743_v61 = vadd.f32 %v741_v60, %v729_v59  ;;  %v966_v60 = vld [vmem:[#allocation20] sm:$0xf] }
 0x238   : > { %v744_v62 = vsub.f32 0.0, %v743_v61 }
 0x23a   : > { %v745_v63 = vmul.f32 1.442695, %v744_v62 }
 0x23c   : > { %2167 = vpow2.f32 %v745_v63 }
 0x246   : > { %v2168_v1 = vpop.eup %2167 }
 0x247   : > { %v747_v2 = vadd.f32 1.0, %v2168_v1 }
 0x249   : > { %2169 = vrcp.f32 %v747_v2 }
 0x253   : > { %v2170_v3 = vpop.eup %2169 }
 0x254   : > { %v3104_v4 = vmul.f32 %v2170_v3, %v743_v61 }
 0x256   : > { %v752_v5 = vpack.c.bf16 %v3104_v4, %v3104_v4 }
 0x258   : > { %1880 = vmatmul.mubr.msk.bf16.vlgmr.msra.gmra.mrb[4].mxu0 %vm801_vm8, %v752_v5 }
 0x259   : > { %1964 = vmatprep.mubr.msk.bf16.mxu0 %vm2626_vm1, %v2625_v0  ;;  %1957 = vmatpush3.bf16.msra.mxu0 %v2163_v30  ;;  %vm1572_vm1 = vcmask 1046534  }
 0x25a   : > { %1958 = vmatprep.subr.bf16.mxu0 %v2625_v0 }
 0x25d   : > { %1959 = vmatpush3.bf16.msra.mxu0 %v2164_v31 }
 0x25e   : > { %1960 = vmatprep.subr.bf16.mxu0 %v2625_v0 }
 0x261   : > { %1961 = vmatpush3.bf16.msra.mxu0 %v2165_v32 }
 0x262   : > { %1962 = vmatprep.subr.bf16.mxu0 %v2625_v0 }
 0x265   : > { %1963 = vmatpush3.bf16.msra.mxu0 %v2166_v33 }
 0x32b   : > { %v839_v7 = vpop.f32.mrb[4].mxu0 }
 0x32c   : > { %v846_v8 = vpack.c.bf16 %v839_v7, %v839_v7  ;;  %v841_v9 = vpop.f32.mrb[5].mxu0 }
 0x32d   : > { %v843_v10 = vpop.f32.mrb[6].mxu0  ;;  %v1166_v11 = vrot.slane %v841_v9, %v718_v26  ;;  %v1152_v12 = vrot.slane %v841_v9, %v3097_v29  ;;  %v1173_v14 = vrot.slane %v841_v9, %v732_v27  ;;  %v1159_v15 = vrot.slane %v841_v9, %v704_v25  ;;  %v3120_v26 = vpop.f32.mrb[0].mxu1 }
 0x32e   : > { %v844_v13 = vpop.f32.mrb[7].mxu0  ;;  %1953 = vmatmul.mubr.bf16.vlgmr.msra.gmra.mrb[4].mxu1 %v846_v8  ;;  %v1187_v18 = vrot.slane %v841_v9, %v1186_v16  ;;  %v1180_v19 = vrot.slane %v841_v9, %v1179_v17  ;;  %v1201_v22 = vrot.slane %v841_v9, %v1200_v20  ;;  %v1194_v23 = vrot.slane %v841_v9, %v1193_v21  ;;  %v1934_v25 = vpop.f32.mrb[1].mxu1 }
 0x32f   : > { %1168 = vbcast.lane.b32.xlu1 %v1166_v11, 256  ;;  %1154 = vbcast.lane.b32.xlu0 %v1152_v12, 256  ;;  %v678_v27 = vpop.f32.mrb[2].mxu1 }
 0x330   : > { %v1935_v28 = vpop.f32.mrb[3].mxu1 }
 0x333   : > { %1175 = vbcast.lane.b32.xlu1 %v1173_v14, 256  ;;  %1161 = vbcast.lane.b32.xlu0 %v1159_v15, 256 }
 0x337   : > { %1189 = vbcast.lane.b32.xlu1 %v1187_v18, 256  ;;  %1182 = vbcast.lane.b32.xlu0 %v1180_v19, 256 }
 0x33b   : > { %1203 = vbcast.lane.b32.xlu1 %v1201_v22, 256  ;;  %1196 = vbcast.lane.b32.xlu0 %v1194_v23, 256 }
 0x33f   : > { %1376 = vbcast.lane.b32.xlu1 %v1166_v11, 260  ;;  %1372 = vbcast.lane.b32.xlu0 %v1159_v15, 260 }
 0x343   : > { %1380 = vbcast.lane.b32.xlu1 %v1173_v14, 260  ;;  %1368 = vbcast.lane.b32.xlu0 %v1152_v12, 260 }
 0x347   : > { %1388 = vbcast.lane.b32.xlu1 %v1187_v18, 260  ;;  %1384 = vbcast.lane.b32.xlu0 %v1180_v19, 260 }
 0x34b   : > { %1396 = vbcast.lane.b32.xlu1 %v1201_v22, 260  ;;  %1392 = vbcast.lane.b32.xlu0 %v1194_v23, 260 }
 0x3a1   : > { %v3129_v53 = vpop.permute.xlu1 %1168  ;;  %v3131_v54 = vpop.permute.xlu0 %1154 }
 0x3a5   : > { %v1176_v10 = vpop.permute.xlu1 %1175  ;;  %v1162_v11 = vpop.permute.xlu0 %1161 }
 0x401   : > { %v952_v35 = vpop.f32.mrb[4].mxu1 }
 0x402   : > { %v953_v36 = vadd.f32 %v1881_v34, %v952_v35  ;;  %v1954_v37 = vpop.f32.mrb[5].mxu1 }
 0x403   : > { %v955_v38 = vpop.f32.mrb[6].mxu1 }
 0x404   : > { %v959_v39 = vmin.f32 %v953_v36, 20.0  ;;  %v1955_v40 = vpop.f32.mrb[7].mxu1  ;;  %vm958_vm10 = vcmp.gt.f32.partialorder %v953_v36, 20.0  ;;  %v1190_v38 = vpop.permute.xlu1 %1189 }
 0x406   : > { %v960_v41 = vmul.f32 1.442695, %v959_v39  ;;  %v1183_v39 = vpop.permute.xlu0 %1182 }
 0x408   : > { %2171 = vpow2.f32 %v960_v41 }
 0x412   : > { %v2172_v42 = vpop.eup %2171 }
 0x413   : > { %v962_v43 = vadd.f32 1.0, %v2172_v42 }
 0x415   : > { %2173 = vlog2.f32 %v962_v43 }
 0x41f   : > { %v2174_v47 = vpop.eup %2173 }
 0x420   : > { %v964_v0 = vmul.f32 0.6931472, %v2174_v47 }
 0x422   : > { %v965_v49 = vsel %vm958_vm10, %v953_v36, %v964_v0 }
 0x423   : > { %v968_v50 = vcombine.high %v965_v49, %v965_v49  ;;  %v975_v51 = vrot.slane %v965_v49, %v974_v48  ;;  %v1098_v52 = vmul.f32 %v965_v49, %v3104_v4 }
 0x425   : > { %v982_v55 = vrot.slane %v968_v50, %v974_v48  ;;  %v983_v56 = vcombine.high %v975_v51, %v975_v51  ;;  %v991_v57 = vrot.slane %v975_v51, %v974_v48  ;;  %v1100_v58 = vcombine.high %v1098_v52, %v1098_v52 }
 0x426   : > { %v1107_v59 = vrot.slane %v1098_v52, %v974_v48 }
 0x427   : > { %v984_v61 = vcombine.high %v982_v55, %v982_v55  ;;  %v998_v62 = vrot.slane %v982_v55, %v974_v48  ;;  %v1005_v24 = vrot.slane %v983_v56, %v974_v48  ;;  %v1013_v63 = vcombine.high %v991_v57, %v991_v57 }
 0x428   : > { %v1020_v1 = vrot.slane %v991_v57, %v3097_v29  ;;  %v1114_v2 = vrot.slane %v1100_v58, %v974_v48  ;;  %v1115_v3 = vcombine.high %v1107_v59, %v1107_v59  ;;  %v1123_v5 = vrot.slane %v1107_v59, %v974_v48  ;;  %v1204_v59 = vpop.permute.xlu1 %1203 }
 0x429   : > { %v1012_v6 = vrot.slane %v984_v61, %v974_v48  ;;  %v1014_v7 = vcombine.high %v998_v62, %v998_v62  ;;  %v1015_v8 = vcombine.high %v1005_v24, %v1005_v24  ;;  %v1024_v9 = vrot.slane %v1005_v24, %v3097_v29 }
 0x42a   : > { %v1028_v12 = vrot.slane %v1013_v63, %v3097_v29  ;;  %v1036_v13 = vrot.slane %v998_v62, %v3097_v29  ;;  %v1057_v14 = vmul.f32 %v1020_v1, %v966_v60  ;;  %v1116_v15 = vcombine.high %v1114_v2, %v1114_v2 }
 0x42b   : > { %v1016_v16 = vcombine.high %v1012_v6, %v1012_v6  ;;  %v1032_v17 = vrot.slane %v1015_v8, %v3097_v29  ;;  %v1040_v18 = vrot.slane %v1012_v6, %v3097_v29  ;;  %v1044_v19 = vrot.slane %v1014_v7, %v3097_v29 }
 0x42c   : > { %v1058_v20 = vmul.f32 %v1024_v9, %v966_v60  ;;  %v1059_v21 = vmul.f32 %v1028_v12, %v966_v60  ;;  %v1061_v22 = vmul.f32 %v1036_v13, %v966_v60  ;;  %v1065_v23 = vmul.f32 1.442695, %v1057_v14 }
 0x42d   : > { %v1048_v25 = vrot.slane %v1016_v16, %v3097_v29  ;;  %v1060_v27 = vmul.f32 %v1032_v17, %v966_v60  ;;  %v1062_v28 = vmul.f32 %v1040_v18, %v966_v60  ;;  %v1063_v30 = vmul.f32 %v1044_v19, %v966_v60 }
 0x42e   : > { %2175 = vpow2.f32 %v1065_v23  ;;  %v1067_v31 = vmul.f32 1.442695, %v1058_v20  ;;  %v1069_v32 = vmul.f32 1.442695, %v1059_v21  ;;  %v1073_v33 = vmul.f32 1.442695, %v1061_v22 }
 0x42f   : > { %v1064_v34 = vmul.f32 %v1048_v25, %v966_v60  ;;  %v1071_v35 = vmul.f32 1.442695, %v1060_v27  ;;  %v1075_v36 = vmul.f32 1.442695, %v1062_v28  ;;  %v1077_v37 = vmul.f32 1.442695, %v1063_v30  ;;  %v1197_v60 = vpop.permute.xlu0 %1196 }
 0x430   : > { %2177 = vpow2.f32 %v1067_v31  ;;  %v1130_v40 = vrot.slane %v1114_v2, %v974_v48  ;;  %v1137_v41 = vrot.slane %v1115_v3, %v974_v48  ;;  %v1144_v42 = vrot.slane %v1116_v15, %v974_v48  ;;  %v1269_v27 = vld [vmem:[#allocation2] sm:$0xf] }
 0x431   : > { %2179 = vpow2.f32 %v1069_v32  ;;  %v1079_v43 = vmul.f32 1.442695, %v1064_v34  ;;  %v1145_v44 = vcombine.high %v1123_v5, %v1123_v5  ;;  %v1208_v45 = vrot.slane %v1123_v5, %v3097_v29 }
 0x432   : > { %2181 = vpow2.f32 %v1071_v35  ;;  %v1146_v46 = vcombine.high %v1130_v40, %v1130_v40  ;;  %v1147_v47 = vcombine.high %v1137_v41, %v1137_v41  ;;  %v1148_v0 = vcombine.high %v1144_v42, %v1144_v42 }
 0x433   : > { %2183 = vpow2.f32 %v1073_v33  ;;  %v1212_v49 = vrot.slane %v1137_v41, %v3097_v29  ;;  %v1216_v50 = vrot.slane %v1145_v44, %v3097_v29  ;;  %v1224_v51 = vrot.slane %v1130_v40, %v3097_v29 }
 0x434   : > { %2185 = vpow2.f32 %v1075_v36  ;;  %v1220_v52 = vrot.slane %v1147_v47, %v3097_v29  ;;  %v1228_v48 = vrot.slane %v1144_v42, %v3097_v29  ;;  %v1232_v55 = vrot.slane %v1146_v46, %v3097_v29 }
 0x435   : > { %2187 = vpow2.f32 %v1077_v37  ;;  %v1236_v56 = vrot.slane %v1148_v0, %v3097_v29  ;;  %v1245_v57 = vmul.f32 %v1208_v45, %v3131_v54  ;;  %v1246_v58 = vmul.f32 %v1212_v49, %v1162_v11 }
 0x436   : > { %2189 = vpow2.f32 %v1079_v43  ;;  %v1247_v61 = vmul.f32 %v1216_v50, %v3129_v53  ;;  %v1248_v62 = vmul.f32 %v1220_v52, %v1176_v10  ;;  %v1249_v24 = vmul.f32 %v1224_v51, %v1183_v39  ;;  %v1373_v52 = vpop.permute.xlu0 %1372 }
 0x437   : > { %v1250_v63 = vmul.f32 %v1228_v48, %v1190_v38  ;;  %v1251_v1 = vmul.f32 %v1232_v55, %v1197_v60  ;;  %v1252_v2 = vmul.f32 %v1236_v56, %v1204_v59  ;;  %v1253_v3 = vpack.c.bf16 %v1245_v57, %v1245_v57 }
 0x438   : > { %v2176_v5 = vpop.eup %2175  ;;  %v1254_v6 = vpack.c.bf16 %v1246_v58, %v1246_v58  ;;  %v1255_v7 = vpack.c.bf16 %v1247_v61, %v1247_v61  ;;  %v1256_v8 = vpack.c.bf16 %v1248_v62, %v1248_v62  ;;  %v1257_v9 = vpack.c.bf16 %v1249_v24, %v1249_v24 }
 0x439   : > { %v1081_v29 = vpack.c.bf16 %v2176_v5, %v2176_v5  ;;  %v1258_v12 = vpack.c.bf16 %v1250_v63, %v1250_v63  ;;  %v1259_v54 = vpack.c.bf16 %v1251_v1, %v1251_v1  ;;  %v1260_v11 = vpack.c.bf16 %v1252_v2, %v1252_v2  ;;  %1261 = vst.msk [vmem:[#allocation5] sm:$0x3] %vm1089_vm11, %v1253_v3 }
 0x43a   : > { %v2178_v13 = vpop.eup %2177  ;;  %1262 = vst.msk [vmem:[#allocation5 + $0x2] sm:$0x3] %vm1089_vm11, %v1254_v6  ;;  %1263 = vst.msk [vmem:[#allocation5 + $0x4] sm:$0x3] %vm1089_vm11, %v1255_v7  ;;  %v1494_v36 = vsub.f32 0.0, %v3120_v26  ;;  %v1369_v2 = vpop.permute.xlu0 %1368 }
 0x43b   : > { %1264 = vst.msk [vmem:[#allocation5 + $0x6] sm:$0x3] %vm1089_vm11, %v1256_v8  ;;  %1265 = vst.msk [vmem:[#allocation5 + $0x8] sm:$0x3] %vm1089_vm11, %v1257_v9  ;;  %v2180_v53 = vpop.eup %2179  ;;  %v1082_v10 = vpack.c.bf16 %v2178_v13, %v2178_v13 }
 0x43c   : > { %1090 = vst.msk [vmem:[#allocation4] sm:$0x3] %vm1089_vm11, %v1081_v29  ;;  %1266 = vst.msk [vmem:[#allocation5 + $0xa] sm:$0x3] %vm1089_vm11, %v1258_v12  ;;  %v2182_v14 = vpop.eup %2181  ;;  %v1083_v15 = vpack.c.bf16 %v2180_v53, %v2180_v53  ;;  %v1495_v44 = vmul.f32 1.442695, %v1494_v36 }
 0x43d   : > { %1267 = vst.msk [vmem:[#allocation5 + $0xc] sm:$0x3] %vm1089_vm11, %v1259_v54  ;;  %1268 = vst.msk [vmem:[#allocation5 + $0xe] sm:$0x3] %vm1089_vm11, %v1260_v11  ;;  %v2184_v16 = vpop.eup %2183  ;;  %v1084_v17 = vpack.c.bf16 %v2182_v14, %v2182_v14 }
 0x43e   : > { %1091 = vst.msk [vmem:[#allocation4 + $0x2] sm:$0x3] %vm1089_vm11, %v1082_v10  ;;  %v2186_v18 = vpop.eup %2185  ;;  %v1085_v19 = vpack.c.bf16 %v2184_v16, %v2184_v16  ;;  %1092 = vst.msk [vmem:[#allocation4 + $0x4] sm:$0x3] %vm1089_vm11, %v1083_v15  ;;  %2191 = vpow2.f32 %v1495_v44 }
 0x43f   : > { %v2188_v20 = vpop.eup %2187  ;;  %v1086_v21 = vpack.c.bf16 %v2186_v18, %v2186_v18  ;;  %1093 = vst.msk [vmem:[#allocation4 + $0x6] sm:$0x3] %vm1089_vm11, %v1084_v17  ;;  %v1377_v17 = vpop.permute.xlu1 %1376 }
 0x440   : > { %v2190_v22 = vpop.eup %2189  ;;  %v1087_v23 = vpack.c.bf16 %v2188_v20, %v2188_v20  ;;  %1094 = vst.msk [vmem:[#allocation4 + $0x8] sm:$0x3] %vm1089_vm11, %v1085_v19  ;;  %v1273_v30 = vld [vmem:[#allocation5] sm:$0x3] }
 0x441   : > { %v1088_v25 = vpack.c.bf16 %v2190_v22, %v2190_v22  ;;  %1095 = vst.msk [vmem:[#allocation4 + $0xa] sm:$0x3] %vm1089_vm11, %v1086_v21  ;;  %v1274_v34 = vunpack.c.l.bf16 %v1273_v30  ;;  %v1283_v35 = vld [vmem:[#allocation5 + $0x2] sm:$0x3]  ;;  %v1293_v43 = vld [vmem:[#allocation5 + $0x4] sm:$0x3] }
 0x442   : > { %1096 = vst.msk [vmem:[#allocation4 + $0xc] sm:$0x3] %vm1089_vm11, %v1087_v23  ;;  %v1284_v42 = vunpack.c.l.bf16 %v1283_v35  ;;  %v1294_v50 = vunpack.c.l.bf16 %v1293_v43  ;;  %v1303_v51 = vld [vmem:[#allocation5 + $0x6] sm:$0x3]  ;;  %v1313_v60 = vld [vmem:[#allocation5 + $0x8] sm:$0x3] }
 0x443   : > { %v1270_v28 = vld [vmem:[#allocation4] sm:$0x3]  ;;  %1097 = vst.msk [vmem:[#allocation4 + $0xe] sm:$0x3] %vm1089_vm11, %v1088_v25  ;;  %v1304_v59 = vunpack.c.l.bf16 %v1303_v51  ;;  %v1314_v6 = vunpack.c.l.bf16 %v1313_v60  ;;  %v1323_v7 = vld [vmem:[#allocation5 + $0xa] sm:$0x3] }
 0x444   : > { %v1271_v31 = vunpack.c.l.bf16 %v1270_v28  ;;  %v1324_v14 = vunpack.c.l.bf16 %v1323_v7  ;;  %v1333_v15 = vld [vmem:[#allocation5 + $0xc] sm:$0x3] }
 0x445   : > { %v1279_v32 = vld [vmem:[#allocation4 + $0x2] sm:$0x3]  ;;  %v1289_v39 = vld [vmem:[#allocation4 + $0x4] sm:$0x3]  ;;  %v1890_v60 = vld [vmem:[#allocation21] ss:$0 sm:$0xff] }
 0x446   : > { %v1272_v33 = vmul.f32 %v1271_v31, %v1269_v27  ;;  %v1280_v38 = vunpack.c.l.bf16 %v1279_v32  ;;  %v1290_v46 = vunpack.c.l.bf16 %v1289_v39  ;;  %v1299_v47 = vld [vmem:[#allocation4 + $0x6] sm:$0x3]  ;;  %v1334_v27 = vunpack.c.l.bf16 %v1333_v15 }
 0x447   : > { %v1300_v55 = vunpack.c.l.bf16 %v1299_v47  ;;  %v1309_v56 = vld [vmem:[#allocation4 + $0x8] sm:$0x3]  ;;  %v3183_v7 = vmul.f32 %v1890_v60, %v3104_v4 }
 0x448   : > { %v1275_v37 = vadd.f32 %v1274_v34, %v1272_v33  ;;  %v1310_v24 = vunpack.c.l.bf16 %v1309_v56  ;;  %v1319_v1 = vld [vmem:[#allocation4 + $0xa] sm:$0x3]  ;;  %v2192_v13 = vpop.eup %2191  ;;  %v1343_v33 = vld [vmem:[#allocation5 + $0xe] sm:$0x3] }
 0x449   : > { %v1320_v12 = vunpack.c.l.bf16 %v1319_v1  ;;  %v1329_v11 = vld [vmem:[#allocation4 + $0xc] sm:$0x3]  ;;  %v1497_v25 = vadd.f32 1.0, %v2192_v13  ;;  %v1344_v43 = vunpack.c.l.bf16 %v1343_v33  ;;  %v1471_v4 = vrot.slane %v3183_v7, 1 }
 0x44a   : > { %v1276_v40 = vpack.c.bf16 %v1275_v37, %v1275_v37  ;;  %v1281_v41 = vmul.f32 %v1280_v38, %v1275_v37  ;;  %v1330_v21 = vunpack.c.l.bf16 %v1329_v11  ;;  %v1339_v28 = vld [vmem:[#allocation4 + $0xe] sm:$0x3]  ;;  %v1472_v33 = vrot.slane %v3183_v7, 2 }
 0x44b   : > { %v1340_v39 = vunpack.c.l.bf16 %v1339_v28  ;;  %2193 = vrcp.f32 %v1497_v25 }
 0x44c   : > { %1277 = vst.msk [vmem:[#allocation5] sm:$0x3] %vm1089_vm11, %v1276_v40  ;;  %v1285_v45 = vadd.f32 %v1284_v42, %v1281_v41  ;;  %v1381_v42 = vpop.permute.xlu1 %1380 }
 0x44e   : > { %v1286_v0 = vpack.c.bf16 %v1285_v45, %v1285_v45  ;;  %v1291_v49 = vmul.f32 %v1290_v46, %v1285_v45 }
 0x450   : > { %1287 = vst.msk [vmem:[#allocation5 + $0x2] sm:$0x3] %vm1089_vm11, %v1286_v0  ;;  %v1295_v48 = vadd.f32 %v1294_v50, %v1291_v49 }
 0x452   : > { %v1296_v57 = vpack.c.bf16 %v1295_v48, %v1295_v48  ;;  %v1301_v58 = vmul.f32 %v1300_v55, %v1295_v48 }
 0x453   : > { %v1350_v61 = vld [vmem:[#allocation5] sm:$0x3] }
 0x454   : > { %1297 = vst.msk [vmem:[#allocation5 + $0x4] sm:$0x3] %vm1089_vm11, %v1296_v57  ;;  %v1305_v62 = vadd.f32 %v1304_v59, %v1301_v58  ;;  %v1358_v63 = vunpack.c.l.bf16 %v1350_v61  ;;  %v1385_v57 = vpop.permute.xlu0 %1384 }
 0x455   : > { %v2194_v13 = vpop.eup %2193 }
 0x456   : > { %v1306_v3 = vpack.c.bf16 %v1305_v62, %v1305_v62  ;;  %v1311_v5 = vmul.f32 %v1310_v24, %v1305_v62  ;;  %v1398_v9 = vmul.f32 %v1369_v2, %v1358_v63 }
 0x457   : > { %v1351_v8 = vld [vmem:[#allocation5 + $0x2] sm:$0x3] }
 0x458   : > { %1307 = vst.msk [vmem:[#allocation5 + $0x6] sm:$0x3] %vm1089_vm11, %v1306_v3  ;;  %v1315_v29 = vadd.f32 %v1314_v6, %v1311_v5  ;;  %v1359_v54 = vunpack.c.l.bf16 %v1351_v8  ;;  %v1406_v19 = vsel %vm559_vm9, %v1398_v9, 0.0  ;;  %v1389_v8 = vpop.permute.xlu1 %1388 }
 0x459   : > { %v1407_v35 = vrot.slane %v1406_v19, 4 }
 0x45a   : > { %v1316_v53 = vpack.c.bf16 %v1315_v29, %v1315_v29  ;;  %v1321_v10 = vmul.f32 %v1320_v12, %v1315_v29  ;;  %v1399_v16 = vmul.f32 %v1373_v52, %v1359_v54 }
 0x45b   : > { %v1352_v18 = vld [vmem:[#allocation5 + $0x4] sm:$0x3]  ;;  %v1408_v49 = vadd.f32 %v1407_v35, %v1406_v19 }
 0x45c   : > { %1317 = vst.msk [vmem:[#allocation5 + $0x8] sm:$0x3] %vm1089_vm11, %v1316_v53  ;;  %v1325_v20 = vadd.f32 %v1324_v14, %v1321_v10  ;;  %v1360_v22 = vunpack.c.l.bf16 %v1352_v18  ;;  %v1413_v23 = vsel %vm559_vm9, %v1399_v16, 0.0  ;;  %v1393_v18 = vpop.permute.xlu0 %1392 }
 0x45d   : > { %v1414_v30 = vrot.slane %v1413_v23, 4  ;;  %v1409_v24 = vrot.slane %v1408_v49, 2 }
 0x45e   : > { %v1326_v31 = vpack.c.bf16 %v1325_v20, %v1325_v20  ;;  %v1331_v32 = vmul.f32 %v1330_v21, %v1325_v20  ;;  %v1400_v34 = vmul.f32 %v1377_v17, %v1360_v22  ;;  %v3188_v22 = vmul.f32 %v2194_v13, %v3120_v26 }
 0x45f   : > { %v1353_v36 = vld [vmem:[#allocation5 + $0x6] sm:$0x3]  ;;  %v1415_v37 = vadd.f32 %v1414_v30, %v1413_v23  ;;  %v1410_v54 = vadd.f32 %v1409_v24, %v1408_v49 }
 0x460   : > { %1327 = vst.msk [vmem:[#allocation5 + $0xa] sm:$0x3] %vm1089_vm11, %v1326_v31  ;;  %v1335_v38 = vadd.f32 %v1334_v27, %v1331_v32  ;;  %v1361_v40 = vunpack.c.l.bf16 %v1353_v36  ;;  %v1420_v41 = vsel %vm559_vm9, %v1400_v34, 0.0  ;;  %v1473_v36 = vrot.slane %v3183_v7, 3 }
 0x461   : > { %v1416_v44 = vrot.slane %v1415_v37, 2  ;;  %v1421_v45 = vrot.slane %v1420_v41, 4  ;;  %v1411_v25 = vrot.slane %v1410_v54, 1 }
 0x462   : > { %v1336_v46 = vpack.c.bf16 %v1335_v38, %v1335_v38  ;;  %v1341_v47 = vmul.f32 %v1340_v39, %v1335_v38  ;;  %v1401_v0 = vmul.f32 %v1381_v42, %v1361_v40  ;;  %v1397_v38 = vpop.permute.xlu1 %1396 }
 0x463   : > { %v1354_v50 = vld [vmem:[#allocation5 + $0x8] sm:$0x3]  ;;  %v1422_v51 = vadd.f32 %v1421_v45, %v1420_v41  ;;  %v1417_v55 = vadd.f32 %v1416_v44, %v1415_v37  ;;  %v1474_v41 = vrot.slane %v3183_v7, 4  ;;  %v1501_v45 = vrot.slane %v3188_v22, 1 }
 0x464   : > { %1337 = vst.msk [vmem:[#allocation5 + $0xc] sm:$0x3] %vm1089_vm11, %v1336_v46  ;;  %v1345_v52 = vadd.f32 %v1344_v43, %v1341_v47  ;;  %v1362_v48 = vunpack.c.l.bf16 %v1354_v50  ;;  %v1427_v56 = vsel %vm559_vm9, %v1401_v0, 0.0  ;;  %v1412_v43 = vadd.f32 %v1411_v25, %v1410_v54 }
 0x465   : > { %v1423_v58 = vrot.slane %v1422_v51, 2  ;;  %v1428_v59 = vrot.slane %v1427_v56, 4  ;;  %v1418_v5 = vrot.slane %v1417_v55, 1 }
 0x466   : > { %v1346_v61 = vpack.c.bf16 %v1345_v52, %v1345_v52  ;;  %1349 = vst.msk [vmem:[#allocation2] sm:$0xf] %vm559_vm9, %v1345_v52  ;;  %v1402_v62 = vmul.f32 %v1385_v57, %v1362_v48  ;;  %v1503_v52 = vrot.slane %v3188_v22, 3  ;;  %v1486_v60 = vadd.f32 %v3183_v7, %v1412_v43 }
 0x467   : > { %v1355_v63 = vld [vmem:[#allocation5 + $0xa] sm:$0x3]  ;;  %v1424_v1 = vadd.f32 %v1423_v58, %v1422_v51  ;;  %v1429_v2 = vadd.f32 %v1428_v59, %v1427_v56  ;;  %v1419_v16 = vadd.f32 %v1418_v5, %v1417_v55  ;;  %v1502_v51 = vrot.slane %v3188_v22, 2 }
 0x468   : > { %1347 = vst.msk [vmem:[#allocation5 + $0xe] sm:$0x3] %vm1089_vm11, %v1346_v61  ;;  %v1363_v3 = vunpack.c.l.bf16 %v1355_v63  ;;  %v1434_v6 = vsel %vm559_vm9, %v1402_v62, 0.0  ;;  %v1475_v59 = vrot.slane %v3183_v7, 5  ;;  %v1504_v61 = vrot.slane %v3188_v22, 4 }
 0x469   : > { %v1430_v9 = vrot.slane %v1429_v2, 2  ;;  %v1435_v29 = vrot.slane %v1434_v6, 4  ;;  %v1425_v11 = vrot.slane %v1424_v1, 1  ;;  %v1487_v37 = vadd.f32 %v1471_v4, %v1419_v16 }
 0x46a   : > { %v1403_v12 = vmul.f32 %v1389_v8, %v1363_v3  ;;  %v1505_v3 = vrot.slane %v3188_v22, 5  ;;  %v1516_v54 = vmul.f32 %v3188_v22, %v1486_v60 }
 0x46b   : > { %v1356_v53 = vld [vmem:[#allocation5 + $0xc] sm:$0x3]  ;;  %v1431_v10 = vadd.f32 %v1430_v9, %v1429_v2  ;;  %v1436_v14 = vadd.f32 %v1435_v29, %v1434_v6  ;;  %v1426_v27 = vadd.f32 %v1425_v11, %v1424_v1  ;;  %v1517_v48 = vmul.f32 %v1501_v45, %v1487_v37 }
 0x46c   : > { %v1364_v15 = vunpack.c.l.bf16 %v1356_v53  ;;  %v1441_v17 = vsel %vm559_vm9, %v1403_v12, 0.0  ;;  %v1476_v12 = vrot.slane %v3183_v7, 6 }
 0x46d   : > { %v1432_v19 = vrot.slane %v1431_v10, 1  ;;  %v1437_v20 = vrot.slane %v1436_v14, 2  ;;  %v1442_v21 = vrot.slane %v1441_v17, 4  ;;  %v1488_v44 = vadd.f32 %v1472_v33, %v1426_v27 }
 0x46e   : > { %v1404_v23 = vmul.f32 %v1393_v18, %v1364_v15  ;;  %v1525_v29 = vpack.c.bf16 %v1517_v48, %v1517_v48  ;;  %v1506_v15 = vrot.slane %v3188_v22, 6  ;;  %v1524_v27 = vpack.c.bf16 %v1516_v54, %v1516_v54  ;;  %v2195_v48 = vld [vmem:[%s3042_s1] sm:$0xff]  ;;  %s2629_s1 = smov [#allocation24]  }
 0x46f   : > { %v1357_v28 = vld [vmem:[#allocation5 + $0xe] sm:$0x3]  ;;  %v1433_v30 = vadd.f32 %v1432_v19, %v1431_v10  ;;  %v1438_v31 = vadd.f32 %v1437_v20, %v1436_v14  ;;  %v1443_v32 = vadd.f32 %v1442_v21, %v1441_v17  ;;  %v1518_v62 = vmul.f32 %v1502_v51, %v1488_v44  ;;  %s2510_s25 = sshll.u32 %s2629_s1, 4  ;;  %s2511_s25 = int_to_ptr.vmem [resolvable:$false] %s2510_s25 }
 0x470   : > { %v1365_v34 = vunpack.c.l.bf16 %v1357_v28  ;;  %v1448_v35 = vsel %vm559_vm9, %v1404_v23, 0.0  ;;  %v1549_v20 = vunpack.c.l.b16 %v1525_v29  ;;  %v1477_v21 = vrot.slane %v3183_v7, 7  ;;  %s2512_s26 = scalar_lea.vmem %s2511_s25, 256  ;;  %p2513_p0 = scmp.lt.s32.totalorder %s3217_s12, %s2511_s25 }
 0x471   : > { %v1439_v39 = vrot.slane %v1438_v31, 1  ;;  %v1444_v40 = vrot.slane %v1443_v32, 2  ;;  %v1449_v26 = vrot.slane %v1448_v35, 4  ;;  %v1489_v49 = vadd.f32 %v1473_v36, %v1433_v30  ;;  %p2514_p7 = scmp.lt.s32.totalorder %s2512_s26, %s2506_s14 }
 0x472   : > { %v1405_v42 = vmul.f32 %v1397_v38, %v1365_v34  ;;  %v1526_v11 = vpack.c.bf16 %v1518_v62, %v1518_v62  ;;  %v1507_v30 = vrot.slane %v3188_v22, 7  ;;  %v1548_v38 = vunpack.c.l.b16 %v1524_v27 }
 0x473   : > { %v1440_v46 = vadd.f32 %v1439_v39, %v1438_v31  ;;  %v1445_v47 = vadd.f32 %v1444_v40, %v1443_v32  ;;  %v1450_v0 = vadd.f32 %v1449_v26, %v1448_v35  ;;  %v1519_v2 = vmul.f32 %v1503_v52, %v1489_v49  ;;  %p2515_p5 = por %p2514_p7, %p2513_p0 }
 0x474   : > { %v1455_v50 = vsel %vm559_vm9, %v1405_v42, 0.0  ;;  %v1550_v4 = vunpack.c.l.b16 %v1526_v11  ;;  %v1556_v35 = vrot.slane %v1549_v20, 7 }
 0x475   : > { %v1446_v55 = vrot.slane %v1445_v47, 1  ;;  %v1451_v56 = vrot.slane %v1450_v0, 2  ;;  %v1456_v57 = vrot.slane %v1455_v50, 4  ;;  %v1490_v58 = vadd.f32 %v1474_v41, %v1440_v46  ;;  %p2516_p8 = pnand %p2515_p5, %p2509_p1 }
 0x476   : > { %v1527_v14 = vpack.c.bf16 %v1519_v2, %v1519_v2  ;;  %v1559_v36 = vrot.slane %v1550_v4, 6  ;;  %v1558_v41 = vsel %vm1557_vm12, %v1556_v35, %v1548_v38 }
 0x477   : > { %v1447_v24 = vadd.f32 %v1446_v55, %v1445_v47  ;;  %v1452_v63 = vadd.f32 %v1451_v56, %v1450_v0  ;;  %v1457_v1 = vadd.f32 %v1456_v57, %v1455_v50  ;;  %v1520_v5 = vmul.f32 %v1504_v61, %v1490_v58 }
 0x478   : > { %v1551_v28 = vunpack.c.l.b16 %v1527_v14  ;;  %v1561_v22 = vsel %vm1560_vm13, %v1559_v36, %v1558_v41 }
 0x479   : > { %v1453_v6 = vrot.slane %v1452_v63, 1  ;;  %v1458_v8 = vrot.slane %v1457_v1, 2  ;;  %v1491_v9 = vadd.f32 %v1475_v59, %v1447_v24  ;;  %v1528_v16 = vpack.c.bf16 %v1520_v5, %v1520_v5 }
 0x47a   : > { %v1562_v40 = vrot.slane %v1551_v28, 5 }
 0x47b   : > { %v1454_v13 = vadd.f32 %v1453_v6, %v1452_v63  ;;  %v1459_v53 = vadd.f32 %v1458_v8, %v1457_v1  ;;  %v1521_v10 = vmul.f32 %v1505_v3, %v1491_v9  ;;  %v1552_v31 = vunpack.c.l.b16 %v1528_v16 }
 0x47c   : > { %v1564_v45 = vsel %vm1563_vm14, %v1562_v40, %v1561_v22 }
 0x47d   : > { %v1460_v17 = vrot.slane %v1459_v53, 1  ;;  %v1492_v18 = vadd.f32 %v1476_v12, %v1454_v13  ;;  %v1529_v19 = vpack.c.bf16 %v1521_v10, %v1521_v10  ;;  %v1565_v7 = vrot.slane %v1552_v31, 4 }
 0x47f   : > { %v1461_v23 = vadd.f32 %v1460_v17, %v1459_v53  ;;  %v1522_v25 = vmul.f32 %v1506_v15, %v1492_v18  ;;  %v1553_v34 = vunpack.c.l.b16 %v1529_v19  ;;  %v1567_v46 = vsel %vm1566_vm15, %v1565_v7, %v1564_v45 }
 0x481   : > { %v1493_v32 = vadd.f32 %v1477_v21, %v1461_v23  ;;  %v1530_v33 = vpack.c.bf16 %v1522_v25, %v1522_v25  ;;  %v1568_v42 = vrot.slane %v1553_v34, 3 }
 0x483   : > { %v1523_v37 = vmul.f32 %v1507_v30, %v1493_v32  ;;  %v1554_v39 = vunpack.c.l.b16 %v1530_v33  ;;  %v1570_v47 = vsel %vm1569_vm0, %v1568_v42, %v1567_v46 }
 0x485   : > { %v1531_v26 = vpack.c.bf16 %v1523_v37, %v1523_v37  ;;  %v1571_v43 = vrot.slane %v1554_v39, 2 }
 0x487   : > { %v1555_v44 = vunpack.c.l.b16 %v1531_v26  ;;  %v1573_v49 = vsel %vm1572_vm1, %v1571_v43, %v1570_v47 }
 0x489   : > { %v1574_v0 = vrot.slane %v1555_v44, 1 }
 0x48b   : > { %v1576_v50 = vsel %vm1575_vm3, %v1574_v0, %v1573_v49 }
 0x48c   : > { %v1577_v51 = vpack.c.b16 %v1576_v50, %v1576_v50 }
 0x48e   : > { %1965 = vmatmul.mubr.msk.bf16.vlgmr.msra.gmra.mrb[8].mxu0 %vm801_vm8, %v1577_v51 }
 0x561   : > { %v1639_v52 = vpop.f32.mrb[8].mxu0 }
 0x562   : > { %v1640_v55 = vadd.f32 %v2195_v48, %v1639_v52  ;;  %v1966_v56 = vpop.f32.mrb[9].mxu0 }
 0x563   : > { %v1642_v57 = vpop.f32.mrb[10].mxu0 }
 0x564   : > { %v1967_v58 = vpop.f32.mrb[11].mxu0  ;;  %1645 = vst.msk [vmem:[%s553_s30] sm:$0xff] %vm581_vm2, %v1640_v55 }
 0x565   : > { %2519 = shalt.err (!%p2516_p8)
}
 0x566   : > { %s2520_s15 = scalar_lea.hbm %s3215_s16, 128  ;;  %s2524_s11 = scalar_lea.hbm %s3320_s0, 256 }
 0x567   : > { %p2521_p3 = scmp.ne.s32.totalorder %s3215_s16, %s2520_s15  ;;  %p2525_p13 = scmp.lt.u32.totalorder %s3215_s16, %s3320_s0 }
 0x568   : > { %p2526_p12 = scmp.lt.u32.totalorder %s2524_s11, %s2520_s15  ;;  %p2528_p2 = scmp.lt.u32.totalorder %s2520_s15, %s3215_s16 }
 0x569   : > { %p2522_p11 = pnand %p2521_p3, %p3321_p9 }
 0x56a   : > { %p2527_p4 = por %p2526_p12, %p2525_p13 }
 0x56b   : > { %p2523_p6 = pneg %p2522_p11 }
 0x56c   : > { %p2529_p10 = por %p2528_p2, %p2527_p4 }
 0x56e   : > { %p2530_p1 = pnand %p2529_p10, %p2523_p6 }
 0x570   : > { %2533 = shalt.err (!%p2530_p1)
}
 0x571   : > { %2010 = dma.vmem_to_hbm [thread:$0]  (%p3321_p9), %s3217_s12, 128, %s3215_s16, %s1647_s20  }
 0x572 PF: > { %s1673_s14 = sand.u32 1, %s2588_s17   ;;  %p3322_p0 = scmp.ne.s32.totalorder %s3312_s13, 0 }
 0x573   : > { %p3323_p7 = scmp.ge.s32.totalorder %s2608_s22, 2  ;;  %s1674_s25 = scalar_lea.sflag [#allocation8], %s1673_s14 }
 0x575   : > { %p2048_p5 = pnand %p3323_p7, %p3322_p0 }
 0x577   : > { %2583 = dma.done.wait (!%p2048_p5), %s1674_s25, 128  }
 0x578   : > { %2585 = vsyncadd (!%p2048_p5), %s1674_s25, 4294967168  ;;  %s32_s22 = sadd.s32 1, %s2608_s22   ;;  %s3324_s17 = smov %s2592_s18 }
 0x579   : > { %p29_p8 = scmp.ge.s32.totalorder %s32_s22, 4   ;;  %s3325_s18 = smov %s2596_s19 }
 0x57a   : > { %s3326_s19 = smov %s2986_s23  ;;  %s3327_s20 = smov %s2604_s21 }
 0x57b   : > { %s3328_s21 = smov %s3330_s27  ;;  %31 = sbr.rel (!%p29_p8) target bundleno = 16 (0x10), region = 167 }
 0x582   :  { %1679 = vsyncpa [#allocation7], 1 }
 0x583   :  { %1681 = vsyncpa [#allocation7 + $0x1], 1 }
 0x584   :  { %1682 = vsyncpa [#allocation10], 1 }
 0x585   :  { %1683 = vsyncpa [#allocation13], 1 }
 0x586   :  { %1684 = vsyncpa [#allocation16], 1 }
 0x587   :  { %1685 = vsyncpa [#allocation19], 1 }
 0x588   :  { %1686 = vsyncpa [#allocation22], 1 }
 0x589   :  { %1687 = vsyncpa [#allocation8], 1 }
 0x58a   :  { %1689 = vsyncpa [#allocation8 + $0x1], 1 }

</bundles_post_ra>
